<compile_context>
chip_gen: v6e
topology: v6e:2x2x1
jax: 0.10.0
libtpu: 0.0.40
codegen_flags: <defaults>
</compile_context>

<pallas_src>
import functools
import math

import jax
import jax.numpy as jnp
from jax import lax
from jax.experimental import pallas as pl
from jax.experimental.pallas import tpu as pltpu

_EPS = 1e-5
_VMEM = pl.BlockSpec(memory_space=pltpu.MemorySpace.VMEM)

# kernel offset k in {0,1,2}  ->  (row parity a, base index h0) for stride-2 taps:
#   padded_row(2*i_out + k) == parity_slab[a][i_out + h0]
_PARITY = ((0, 0), (1, 0), (0, 1))


# --------------------------------------------------------------------------- #
# in-kernel helpers
# --------------------------------------------------------------------------- #
def _bn_act(y, gamma, beta, relu):
    """Train-mode BatchNorm (batch stats, biased var, eps=1e-5), single pass,
    gamma*rsqrt folded into one scale; optional fused ReLU.  y: (rows, C) f32."""
    mu = jnp.mean(y, axis=0, keepdims=True)
    var = jnp.maximum(jnp.mean(y * y, axis=0, keepdims=True) - mu * mu, 0.0)
    scale = gamma * lax.rsqrt(var + _EPS)
    out = y * scale + (beta - mu * scale)
    return jnp.maximum(out, 0.0) if relu else out


def _patches_s1(src_ref, h, w):
    """im2col patches for a 3x3 / stride-1 / pad-1 conv.
    src_ref: (N, h+2, w+2, C) zero-padded input.  Returns (N*h*w, 9*C) bf16."""
    n, _, _, c = src_ref.shape
    taps = [src_ref[:, kh:kh + h, kw:kw + w, :]
            for kh in range(3) for kw in range(3)]
    return (jnp.concatenate(taps, axis=-1)
            .reshape(n * h * w, 9 * c).astype(jnp.bfloat16))


def _patches_s2(xps_ref):
    """im2col patches for a 3x3 / stride-2 / pad-1 conv from the parity-split
    padded input (4, N, Ho+1, Wo+1, C); only static unstrided slices needed."""
    _, n, hop, wop, c = xps_ref.shape
    ho, wo = hop - 1, wop - 1
    taps = []
    for kh in range(3):
        a, h0 = _PARITY[kh]
        for kw in range(3):
            b, w0 = _PARITY[kw]
            taps.append(xps_ref[2 * a + b, :, h0:h0 + ho, w0:w0 + wo, :])
    return (jnp.concatenate(taps, axis=-1)
            .reshape(n * ho * wo, 9 * c).astype(jnp.bfloat16))


def _store_padded(pad_ref, y4d):
    """Write y (N,H,W,C) into pad_ref (N,H+2,W+2,C); zero only the 1-wide halo."""
    n, hp, wp, c = pad_ref.shape
    h, w = hp - 2, wp - 2
    dt = pad_ref.dtype
    pad_ref[:, 0:1, :, :] = jnp.zeros((n, 1, wp, c), dt)
    pad_ref[:, hp - 1:hp, :, :] = jnp.zeros((n, 1, wp, c), dt)
    pad_ref[:, 1:1 + h, 0:1, :] = jnp.zeros((n, h, 1, c), dt)
    pad_ref[:, 1:1 + h, wp - 1:wp, :] = jnp.zeros((n, h, 1, c), dt)
    pad_ref[:, 1:1 + h, 1:1 + w, :] = y4d.astype(dt)


# --------------------------------------------------------------------------- #
# Pallas kernels (one fused kernel per BasicBlock)
# --------------------------------------------------------------------------- #
def _basic_block_kernel(xp_ref, w1_ref, g1_ref, b1_ref, w2_ref, g2_ref, b2_ref,
                        o_ref, pad_ref):
    """Identity-residual BasicBlock.  xp_ref: zero-padded input (N,H+2,W+2,C)."""
    n, hp, wp, c = xp_ref.shape
    h, w = hp - 2, wp - 2
    cm = w1_ref.shape[1]

    # conv1 (3x3, s=1, p=1) -> BN1 -> ReLU     (single im2col bf16 MXU matmul)
    y1 = jnp.dot(_patches_s1(xp_ref, h, w), w1_ref[...],
                 preferred_element_type=jnp.float32)
    y1 = _bn_act(y1, g1_ref[...], b1_ref[...], relu=True)

    # conv2 (3x3, s=1, p=1) -> BN2
    _store_padded(pad_ref, y1.reshape(n, h, w, cm))
    y2 = jnp.dot(_patches_s1(pad_ref, h, w), w2_ref[...],
                 preferred_element_type=jnp.float32)
    y2 = _bn_act(y2, g2_ref[...], b2_ref[...], relu=False)

    # identity residual (exact f32) + ReLU
    x_res = xp_ref[:, 1:1 + h, 1:1 + w, :].reshape(n * h * w, c)
    o_ref[...] = jnp.maximum(y2 + x_res, 0.0).reshape(n, h, w, c)


def _basic_block_down_kernel(xin_ref, w1_ref, g1_ref, b1_ref, w2_ref, g2_ref,
                             b2_ref, wd_ref, bd_ref, o_ref, pad_ref, *, stride):
    """First block of a stage: conv1 has stride `stride`, residual branch is a
    raw 3x3 conv (with bias) at the same stride.  For stride=2 the input arrives
    parity-split as (4, N, Ho+1, Wo+1, Cin); for stride=1 as (N, H+2, W+2, Cin)."""
    if stride == 2:
        _, n, hop, wop, _ = xin_ref.shape
        ho, wo = hop - 1, wop - 1
        p1 = _patches_s2(xin_ref)
    else:
        n, hp, wp, _ = xin_ref.shape
        ho, wo = hp - 2, wp - 2
        p1 = _patches_s1(xin_ref, ho, wo)
    cm = w1_ref.shape[1]
    co = w2_ref.shape[1]

    # conv1 -> BN1 -> ReLU
    y1 = jnp.dot(p1, w1_ref[...], preferred_element_type=jnp.float32)
    y1 = _bn_act(y1, g1_ref[...], b1_ref[...], relu=True)

    # conv2 (3x3, s=1, p=1) -> BN2
    _store_padded(pad_ref, y1.reshape(n, ho, wo, cm))
    y2 = jnp.dot(_patches_s1(pad_ref, ho, wo), w2_ref[...],
                 preferred_element_type=jnp.float32)
    y2 = _bn_act(y2, g2_ref[...], b2_ref[...], relu=False)

    # downsample branch: 3x3/stride/pad-1 conv with bias — reuses conv1 patches.
    idt = jnp.dot(p1, wd_ref[...], preferred_element_type=jnp.float32) + bd_ref[...]

    o_ref[...] = jnp.maximum(y2 + idt, 0.0).reshape(n, ho, wo, co)


# --------------------------------------------------------------------------- #
# wrappers
# --------------------------------------------------------------------------- #
def _run_basic_block(x_nhwc, p):
    n, h, w, c = x_nhwc.shape
    xp = jnp.pad(x_nhwc, ((0, 0), (1, 1), (1, 1), (0, 0)))
    args = (
        xp,
        p["w1"].reshape(9 * c, c).astype(jnp.bfloat16),
        p["g1"].reshape(1, c), p["b1"].reshape(1, c),
        p["w2"].reshape(9 * c, c).astype(jnp.bfloat16),
        p["g2"].reshape(1, c), p["b2"].reshape(1, c),
    )
    return pl.pallas_call(
        _basic_block_kernel,
        out_shape=jax.ShapeDtypeStruct((n, h, w, c), jnp.float32),
        in_specs=[_VMEM] * 7,
        out_specs=_VMEM,
        scratch_shapes=[pltpu.VMEM((n, h + 2, w + 2, c), jnp.float32)],
    )(*args)


def _run_basic_block_down(x_nhwc, p, stride):
    n, h, w, cin = x_nhwc.shape
    cout = p["w1"].shape[-1]
    ho = (h - 1) // stride + 1
    wo = (w - 1) // stride + 1
    xpad = jnp.pad(x_nhwc, ((0, 0), (1, 1), (1, 1), (0, 0)))
    if stride == 2:
        assert h % 2 == 0 and w % 2 == 0
        # parity split (done in plain JAX) so the kernel reads stride-2 taps as
        # plain static slices:  xin[2a+b, n, i, j, c] = xpad[n, 2i+a, 2j+b, c]
        xin = jnp.stack([xpad[:, a::2, b::2, :]
                         for a in range(2) for b in range(2)], axis=0)
    else:
        xin = xpad
    args = (
        xin,
        p["w1"].reshape(9 * cin, cout).astype(jnp.bfloat16),
        p["g1"].reshape(1, cout), p["b1"].reshape(1, cout),
        p["w2"].reshape(9 * cout, cout).astype(jnp.bfloat16),
        p["g2"].reshape(1, cout), p["b2"].reshape(1, cout),
        p["wd"].reshape(9 * cin, cout).astype(jnp.bfloat16),
        p["bd"].reshape(1, cout),
    )
    return pl.pallas_call(
        functools.partial(_basic_block_down_kernel, stride=stride),
        out_shape=jax.ShapeDtypeStruct((n, ho, wo, cout), jnp.float32),
        in_specs=[_VMEM] * 9,
        out_specs=_VMEM,
        scratch_shapes=[pltpu.VMEM((n, ho + 2, wo + 2, cout), jnp.float32)],
    )(*args)


def custom_resnet_forward(x_nchw, params):
    """CustomResNet forward: input NCHW, returns the list of per-stage feats (NCHW)."""
    x = jnp.transpose(x_nchw, (0, 2, 3, 1)).astype(jnp.float32)   # -> NHWC
    feats = []
    for stage in params:
        for blk in stage:
            if "wd" in blk:
                x = _run_basic_block_down(x, blk, blk["stride"])
            else:
                x = _run_basic_block(x, blk)
        feats.append(jnp.transpose(x, (0, 3, 1, 2)))               # -> NCHW
    return feats


# --------------------------------------------------------------------------- #
# deterministic synthetic parameters (shapes follow the torch module)
# --------------------------------------------------------------------------- #
def init_params(key, numC_input, num_layer=(2, 2, 2), stride=(2, 2, 2),
                num_channels=None):
    if num_channels is None:
        num_channels = [numC_input * 2 ** (i + 1) for i in range(len(num_layer))]

    def conv_w(k, cin, cout):
        return (jax.random.normal(k, (3, 3, cin, cout))
                / math.sqrt(9 * cin)).astype(jnp.float32)          # HWIO

    def bn_p(k, c):
        k1, k2 = jax.random.split(k)
        return ((1.0 + 0.1 * jax.random.normal(k1, (c,))).astype(jnp.float32),
                (0.05 * jax.random.normal(k2, (c,))).astype(jnp.float32))

    params = []
    curr = numC_input
    for i, (nl, s) in enumerate(zip(num_layer, stride)):
        cout = num_channels[i]
        stage = []
        for b in range(nl):
            key, k1, k2, k3, k4, k5, k6 = jax.random.split(key, 7)
            cin = curr if b == 0 else cout
            g1, be1 = bn_p(k2, cout)
            g2, be2 = bn_p(k4, cout)
            blk = dict(w1=conv_w(k1, cin, cout), g1=g1, b1=be1,
                       w2=conv_w(k3, cout, cout), g2=g2, b2=be2)
            if b == 0:
                blk["wd"] = conv_w(k5, cin, cout)
                blk["bd"] = (0.05 * jax.random.normal(k6, (cout,))).astype(jnp.float32)
                blk["stride"] = int(s)
            stage.append(blk)
        curr = cout
        params.append(stage)
    return params


# --------------------------------------------------------------------------- #
# pure-JAX reference mirroring the torch forward (bf16 conv operands to match
# the kernel's MXU precision; everything else f32)
# --------------------------------------------------------------------------- #
def reference_forward(x_nchw, params):
    x = jnp.transpose(x_nchw, (0, 2, 3, 1)).astype(jnp.float32)

    def conv(v, w, s):
        return lax.conv_general_dilated(
            v.astype(jnp.bfloat16), w.astype(jnp.bfloat16),
            window_strides=(s, s), padding=[(1, 1), (1, 1)],
            dimension_numbers=("NHWC", "HWIO", "NHWC"),
            preferred_element_type=jnp.float32)

    def bn(v, g, b):
        mu = jnp.mean(v, axis=(0, 1, 2), keepdims=True)
        var = jnp.mean((v - mu) ** 2, axis=(0, 1, 2), keepdims=True)
        return (v - mu) * lax.rsqrt(var + _EPS) * g + b

    feats = []
    for stage in params:
        for blk in stage:
            s = blk.get("stride", 1)
            y = jax.nn.relu(bn(conv(x, blk["w1"], s), blk["g1"], blk["b1"]))
            y = bn(conv(y, blk["w2"], 1), blk["g2"], blk["b2"])
            idt = conv(x, blk["wd"], s) + blk["bd"] if "wd" in blk else x
            x = jax.nn.relu(y + idt)
        feats.append(jnp.transpose(x, (0, 3, 1, 2)))
    return feats


# --------------------------------------------------------------------------- #
if __name__ == "__main__":
    key = jax.random.PRNGKey(0)
    kx, kp = jax.random.split(key)

    # CustomResNet(numC_input=4) with default config -> channels [8, 16, 32]
    N, C_in, H, W = 2, 4, 16, 16
    x = jax.random.normal(kx, (N, C_in, H, W), jnp.float32)        # torch NCHW
    params = init_params(kp, C_in)

    feats = custom_resnet_forward(x, params)
    feats = jax.block_until_ready(feats)

    refs = reference_forward(x, params)
    expected_shapes = [(N, 8, 8, 8), (N, 16, 4, 4), (N, 32, 2, 2)]
    for f, r, shp in zip(feats, refs, expected_shapes):
        assert f.shape == shp, (f.shape, shp)
        if not bool(jnp.all(jnp.isfinite(f))):
            raise RuntimeError("non-finite values in kernel output")
        max_err = float(jnp.max(jnp.abs(f - r)))
        if max_err > 2e-2:
            raise RuntimeError(f"kernel/reference mismatch: max_err={max_err}")
    print("KERNEL_OK")
</pallas_src>

<mosaic_0001>
module attributes {stable_mosaic.version = 11 : i64} {
  func.func @_basic_block_down_kernel(%arg0: memref<4x2x9x9x4xf32, #tpu.memory_space<vmem>>, %arg1: memref<36x8xbf16, #tpu.memory_space<vmem>>, %arg2: memref<1x8xf32, #tpu.memory_space<vmem>>, %arg3: memref<1x8xf32, #tpu.memory_space<vmem>>, %arg4: memref<72x8xbf16, #tpu.memory_space<vmem>>, %arg5: memref<1x8xf32, #tpu.memory_space<vmem>>, %arg6: memref<1x8xf32, #tpu.memory_space<vmem>>, %arg7: memref<36x8xbf16, #tpu.memory_space<vmem>>, %arg8: memref<1x8xf32, #tpu.memory_space<vmem>>, %arg9: memref<2x8x8x8xf32, #tpu.memory_space<vmem>>, %arg10: memref<2x10x10x8xf32, #tpu.memory_space<vmem>>) attributes {dimension_semantics = [], scalar_prefetch = 0 : i64, scratch_operands = 1 : i64, tpu.core_type = #tpu.core_type<tc>} {
    %c0 = arith.constant 0 : index
    %c0_0 = arith.constant 0 : index
    %c0_1 = arith.constant 0 : index
    %c0_2 = arith.constant 0 : index
    %c0_3 = arith.constant 0 : index
    %0 = vector.load %arg0[%c0, %c0_0, %c0_1, %c0_2, %c0_3] : memref<4x2x9x9x4xf32, #tpu.memory_space<vmem>>, vector<1x2x8x8x4xf32>
    %1 = vector.shape_cast %0 : vector<1x2x8x8x4xf32> to vector<2x8x8x4xf32>
    %c1 = arith.constant 1 : index
    %c0_4 = arith.constant 0 : index
    %c0_5 = arith.constant 0 : index
    %c0_6 = arith.constant 0 : index
    %c0_7 = arith.constant 0 : index
    %2 = vector.load %arg0[%c1, %c0_4, %c0_5, %c0_6, %c0_7] : memref<4x2x9x9x4xf32, #tpu.memory_space<vmem>>, vector<1x2x8x8x4xf32>
    %3 = vector.shape_cast %2 : vector<1x2x8x8x4xf32> to vector<2x8x8x4xf32>
    %c0_8 = arith.constant 0 : index
    %c0_9 = arith.constant 0 : index
    %c0_10 = arith.constant 0 : index
    %c1_11 = arith.constant 1 : index
    %c0_12 = arith.constant 0 : index
    %4 = vector.load %arg0[%c0_8, %c0_9, %c0_10, %c1_11, %c0_12] : memref<4x2x9x9x4xf32, #tpu.memory_space<vmem>>, vector<1x2x8x8x4xf32>
    %5 = vector.shape_cast %4 : vector<1x2x8x8x4xf32> to vector<2x8x8x4xf32>
    %c2 = arith.constant 2 : index
    %c0_13 = arith.constant 0 : index
    %c0_14 = arith.constant 0 : index
    %c0_15 = arith.constant 0 : index
    %c0_16 = arith.constant 0 : index
    %6 = vector.load %arg0[%c2, %c0_13, %c0_14, %c0_15, %c0_16] : memref<4x2x9x9x4xf32, #tpu.memory_space<vmem>>, vector<1x2x8x8x4xf32>
    %7 = vector.shape_cast %6 : vector<1x2x8x8x4xf32> to vector<2x8x8x4xf32>
    %c3 = arith.constant 3 : index
    %c0_17 = arith.constant 0 : index
    %c0_18 = arith.constant 0 : index
    %c0_19 = arith.constant 0 : index
    %c0_20 = arith.constant 0 : index
    %8 = vector.load %arg0[%c3, %c0_17, %c0_18, %c0_19, %c0_20] : memref<4x2x9x9x4xf32, #tpu.memory_space<vmem>>, vector<1x2x8x8x4xf32>
    %9 = vector.shape_cast %8 : vector<1x2x8x8x4xf32> to vector<2x8x8x4xf32>
    %c2_21 = arith.constant 2 : index
    %c0_22 = arith.constant 0 : index
    %c0_23 = arith.constant 0 : index
    %c1_24 = arith.constant 1 : index
    %c0_25 = arith.constant 0 : index
    %10 = vector.load %arg0[%c2_21, %c0_22, %c0_23, %c1_24, %c0_25] : memref<4x2x9x9x4xf32, #tpu.memory_space<vmem>>, vector<1x2x8x8x4xf32>
    %11 = vector.shape_cast %10 : vector<1x2x8x8x4xf32> to vector<2x8x8x4xf32>
    %c0_26 = arith.constant 0 : index
    %c0_27 = arith.constant 0 : index
    %c1_28 = arith.constant 1 : index
    %c0_29 = arith.constant 0 : index
    %c0_30 = arith.constant 0 : index
    %12 = vector.load %arg0[%c0_26, %c0_27, %c1_28, %c0_29, %c0_30] : memref<4x2x9x9x4xf32, #tpu.memory_space<vmem>>, vector<1x2x8x8x4xf32>
    %13 = vector.shape_cast %12 : vector<1x2x8x8x4xf32> to vector<2x8x8x4xf32>
    %c1_31 = arith.constant 1 : index
    %c0_32 = arith.constant 0 : index
    %c1_33 = arith.constant 1 : index
    %c0_34 = arith.constant 0 : index
    %c0_35 = arith.constant 0 : index
    %14 = vector.load %arg0[%c1_31, %c0_32, %c1_33, %c0_34, %c0_35] : memref<4x2x9x9x4xf32, #tpu.memory_space<vmem>>, vector<1x2x8x8x4xf32>
    %15 = vector.shape_cast %14 : vector<1x2x8x8x4xf32> to vector<2x8x8x4xf32>
    %c0_36 = arith.constant 0 : index
    %c0_37 = arith.constant 0 : index
    %c1_38 = arith.constant 1 : index
    %c1_39 = arith.constant 1 : index
    %c0_40 = arith.constant 0 : index
    %16 = vector.load %arg0[%c0_36, %c0_37, %c1_38, %c1_39, %c0_40] : memref<4x2x9x9x4xf32, #tpu.memory_space<vmem>>, vector<1x2x8x8x4xf32>
    %17 = vector.shape_cast %16 : vector<1x2x8x8x4xf32> to vector<2x8x8x4xf32>
    %18 = tpu.concatenate %1, %3, %5, %7, %9, %11, %13, %15, %17 in 3 : vector<2x8x8x4xf32>, vector<2x8x8x4xf32>, vector<2x8x8x4xf32>, vector<2x8x8x4xf32>, vector<2x8x8x4xf32>, vector<2x8x8x4xf32>, vector<2x8x8x4xf32>, vector<2x8x8x4xf32>, vector<2x8x8x4xf32> -> vector<2x8x8x36xf32>
    %19 = vector.shape_cast %18 : vector<2x8x8x36xf32> to vector<128x36xf32>
    %20 = arith.truncf %19 : vector<128x36xf32> to vector<128x36xbf16>
    %c0_41 = arith.constant 0 : index
    %c0_42 = arith.constant 0 : index
    %21 = vector.load %arg1[%c0_41, %c0_42] : memref<36x8xbf16, #tpu.memory_space<vmem>>, vector<36x8xbf16>
    %cst = arith.constant dense<0.000000e+00> : vector<128x8xf32>
    %22 = tpu.matmul %20, %21, %cst {dimension_numbers = #tpu.dot_dimension_numbers<[1], [0], [0], [1], [0, 0, 1, 1], [], []>} : vector<128x36xbf16>, vector<36x8xbf16>, vector<128x8xf32> -> vector<128x8xf32>
    %c0_43 = arith.constant 0 : index
    %c0_44 = arith.constant 0 : index
    %23 = vector.load %arg2[%c0_43, %c0_44] : memref<1x8xf32, #tpu.memory_space<vmem>>, vector<1x8xf32>
    %c0_45 = arith.constant 0 : index
    %c0_46 = arith.constant 0 : index
    %24 = vector.load %arg3[%c0_45, %c0_46] : memref<1x8xf32, #tpu.memory_space<vmem>>, vector<1x8xf32>
    %cst_47 = arith.constant dense<0.000000e+00> : vector<8xf32>
    %25 = vector.multi_reduction <add>, %22, %cst_47 [0] : vector<128x8xf32> to vector<8xf32>
    %26 = vector.shape_cast %25 : vector<8xf32> to vector<1x8xf32>
    %cst_48 = arith.constant 1.280000e+02 : f32
    %27 = vector.broadcast %cst_48 : f32 to vector<1x8xf32>
    %28 = arith.divf %26, %27 : vector<1x8xf32>
    %29 = arith.mulf %22, %22 : vector<128x8xf32>
    %cst_49 = arith.constant dense<0.000000e+00> : vector<8xf32>
    %30 = vector.multi_reduction <add>, %29, %cst_49 [0] : vector<128x8xf32> to vector<8xf32>
    %31 = vector.shape_cast %30 : vector<8xf32> to vector<1x8xf32>
    %cst_50 = arith.constant 1.280000e+02 : f32
    %32 = vector.broadcast %cst_50 : f32 to vector<1x8xf32>
    %33 = arith.divf %31, %32 : vector<1x8xf32>
    %34 = arith.mulf %28, %28 : vector<1x8xf32>
    %35 = arith.subf %33, %34 : vector<1x8xf32>
    %cst_51 = arith.constant 0.000000e+00 : f32
    %36 = vector.broadcast %cst_51 : f32 to vector<1x8xf32>
    %37 = arith.maximumf %35, %36 : vector<1x8xf32>
    %cst_52 = arith.constant 9.99999974E-6 : f32
    %38 = vector.broadcast %cst_52 : f32 to vector<1x8xf32>
    %39 = arith.addf %37, %38 : vector<1x8xf32>
    %40 = math.rsqrt %39 : vector<1x8xf32>
    %41 = arith.mulf %23, %40 : vector<1x8xf32>
    %42 = vector.broadcast %41 : vector<1x8xf32> to vector<128x8xf32>
    %43 = arith.mulf %22, %42 : vector<128x8xf32>
    %44 = arith.mulf %28, %41 : vector<1x8xf32>
    %45 = arith.subf %24, %44 : vector<1x8xf32>
    %46 = vector.broadcast %45 : vector<1x8xf32> to vector<128x8xf32>
    %47 = arith.addf %43, %46 : vector<128x8xf32>
    %cst_53 = arith.constant 0.000000e+00 : f32
    %48 = vector.broadcast %cst_53 : f32 to vector<128x8xf32>
    %49 = arith.maximumf %47, %48 : vector<128x8xf32>
    %50 = vector.shape_cast %49 : vector<128x8xf32> to vector<2x8x8x8xf32>
    %cst_54 = arith.constant 0.000000e+00 : f32
    %51 = vector.broadcast %cst_54 : f32 to vector<2x1x10x8xf32>
    %c0_55 = arith.constant 0 : index
    %c0_56 = arith.constant 0 : index
    %c0_57 = arith.constant 0 : index
    %c0_58 = arith.constant 0 : index
    %52 = vector.load %arg10[%c0_55, %c0_56, %c0_57, %c0_58] : memref<2x10x10x8xf32, #tpu.memory_space<vmem>>, vector<2x1x10x8xf32>
    tpu.vector_store %arg10[%c0_55, %c0_56, %c0_57, %c0_58], %51 {strides = array<i32>} : memref<2x10x10x8xf32, #tpu.memory_space<vmem>>, vector<2x1x10x8xf32>,
    %cst_59 = arith.constant 0.000000e+00 : f32
    %53 = vector.broadcast %cst_59 : f32 to vector<2x1x10x8xf32>
    %c0_60 = arith.constant 0 : index
    %c9 = arith.constant 9 : index
    %c0_61 = arith.constant 0 : index
    %c0_62 = arith.constant 0 : index
    %54 = vector.load %arg10[%c0_60, %c9, %c0_61, %c0_62] : memref<2x10x10x8xf32, #tpu.memory_space<vmem>>, vector<2x1x10x8xf32>
    tpu.vector_store %arg10[%c0_60, %c9, %c0_61, %c0_62], %53 {strides = array<i32>} : memref<2x10x10x8xf32, #tpu.memory_space<vmem>>, vector<2x1x10x8xf32>,
    %cst_63 = arith.constant 0.000000e+00 : f32
    %55 = vector.broadcast %cst_63 : f32 to vector<2x8x1x8xf32>
    %c0_64 = arith.constant 0 : index
    %c1_65 = arith.constant 1 : index
    %c0_66 = arith.constant 0 : index
    %c0_67 = arith.constant 0 : index
    %56 = vector.load %arg10[%c0_64, %c1_65, %c0_66, %c0_67] : memref<2x10x10x8xf32, #tpu.memory_space<vmem>>, vector<2x8x1x8xf32>
    tpu.vector_store %arg10[%c0_64, %c1_65, %c0_66, %c0_67], %55 {strides = array<i32>} : memref<2x10x10x8xf32, #tpu.memory_space<vmem>>, vector<2x8x1x8xf32>,
    %cst_68 = arith.constant 0.000000e+00 : f32
    %57 = vector.broadcast %cst_68 : f32 to vector<2x8x1x8xf32>
    %c0_69 = arith.constant 0 : index
    %c1_70 = arith.constant 1 : index
    %c9_71 = arith.constant 9 : index
    %c0_72 = arith.constant 0 : index
    %58 = vector.load %arg10[%c0_69, %c1_70, %c9_71, %c0_72] : memref<2x10x10x8xf32, #tpu.memory_space<vmem>>, vector<2x8x1x8xf32>
    tpu.vector_store %arg10[%c0_69, %c1_70, %c9_71, %c0_72], %57 {strides = array<i32>} : memref<2x10x10x8xf32, #tpu.memory_space<vmem>>, vector<2x8x1x8xf32>,
    %c0_73 = arith.constant 0 : index
    %c1_74 = arith.constant 1 : index
    %c1_75 = arith.constant 1 : index
    %c0_76 = arith.constant 0 : index
    %59 = vector.load %arg10[%c0_73, %c1_74, %c1_75, %c0_76] : memref<2x10x10x8xf32, #tpu.memory_space<vmem>>, vector<2x8x8x8xf32>
    tpu.vector_store %arg10[%c0_73, %c1_74, %c1_75, %c0_76], %50 {strides = array<i32>} : memref<2x10x10x8xf32, #tpu.memory_space<vmem>>, vector<2x8x8x8xf32>,
    %c0_77 = arith.constant 0 : index
    %c0_78 = arith.constant 0 : index
    %c0_79 = arith.constant 0 : index
    %c0_80 = arith.constant 0 : index
    %60 = vector.load %arg10[%c0_77, %c0_78, %c0_79, %c0_80] : memref<2x10x10x8xf32, #tpu.memory_space<vmem>>, vector<2x8x8x8xf32>
    %c0_81 = arith.constant 0 : index
    %c0_82 = arith.constant 0 : index
    %c1_83 = arith.constant 1 : index
    %c0_84 = arith.constant 0 : index
    %61 = vector.load %arg10[%c0_81, %c0_82, %c1_83, %c0_84] : memref<2x10x10x8xf32, #tpu.memory_space<vmem>>, vector<2x8x8x8xf32>
    %c0_85 = arith.constant 0 : index
    %c0_86 = arith.constant 0 : index
    %c2_87 = arith.constant 2 : index
    %c0_88 = arith.constant 0 : index
    %62 = vector.load %arg10[%c0_85, %c0_86, %c2_87, %c0_88] : memref<2x10x10x8xf32, #tpu.memory_space<vmem>>, vector<2x8x8x8xf32>
    %c0_89 = arith.constant 0 : index
    %c1_90 = arith.constant 1 : index
    %c0_91 = arith.constant 0 : index
    %c0_92 = arith.constant 0 : index
    %63 = vector.load %arg10[%c0_89, %c1_90, %c0_91, %c0_92] : memref<2x10x10x8xf32, #tpu.memory_space<vmem>>, vector<2x8x8x8xf32>
    %c0_93 = arith.constant 0 : index
    %c1_94 = arith.constant 1 : index
    %c1_95 = arith.constant 1 : index
    %c0_96 = arith.constant 0 : index
    %64 = vector.load %arg10[%c0_93, %c1_94, %c1_95, %c0_96] : memref<2x10x10x8xf32, #tpu.memory_space<vmem>>, vector<2x8x8x8xf32>
    %c0_97 = arith.constant 0 : index
    %c1_98 = arith.constant 1 : index
    %c2_99 = arith.constant 2 : index
    %c0_100 = arith.constant 0 : index
    %65 = vector.load %arg10[%c0_97, %c1_98, %c2_99, %c0_100] : memref<2x10x10x8xf32, #tpu.memory_space<vmem>>, vector<2x8x8x8xf32>
    %c0_101 = arith.constant 0 : index
    %c2_102 = arith.constant 2 : index
    %c0_103 = arith.constant 0 : index
    %c0_104 = arith.constant 0 : index
    %66 = vector.load %arg10[%c0_101, %c2_102, %c0_103, %c0_104] : memref<2x10x10x8xf32, #tpu.memory_space<vmem>>, vector<2x8x8x8xf32>
    %c0_105 = arith.constant 0 : index
    %c2_106 = arith.constant 2 : index
    %c1_107 = arith.constant 1 : index
    %c0_108 = arith.constant 0 : index
    %67 = vector.load %arg10[%c0_105, %c2_106, %c1_107, %c0_108] : memref<2x10x10x8xf32, #tpu.memory_space<vmem>>, vector<2x8x8x8xf32>
    %c0_109 = arith.constant 0 : index
    %c2_110 = arith.constant 2 : index
    %c2_111 = arith.constant 2 : index
    %c0_112 = arith.constant 0 : index
    %68 = vector.load %arg10[%c0_109, %c2_110, %c2_111, %c0_112] : memref<2x10x10x8xf32, #tpu.memory_space<vmem>>, vector<2x8x8x8xf32>
    %69 = tpu.concatenate %60, %61, %62, %63, %64, %65, %66, %67, %68 in 3 : vector<2x8x8x8xf32>, vector<2x8x8x8xf32>, vector<2x8x8x8xf32>, vector<2x8x8x8xf32>, vector<2x8x8x8xf32>, vector<2x8x8x8xf32>, vector<2x8x8x8xf32>, vector<2x8x8x8xf32>, vector<2x8x8x8xf32> -> vector<2x8x8x72xf32>
    %70 = vector.shape_cast %69 : vector<2x8x8x72xf32> to vector<128x72xf32>
    %71 = arith.truncf %70 : vector<128x72xf32> to vector<128x72xbf16>
    %c0_113 = arith.constant 0 : index
    %c0_114 = arith.constant 0 : index
    %72 = vector.load %arg4[%c0_113, %c0_114] : memref<72x8xbf16, #tpu.memory_space<vmem>>, vector<72x8xbf16>
    %cst_115 = arith.constant dense<0.000000e+00> : vector<128x8xf32>
    %73 = tpu.matmul %71, %72, %cst_115 {dimension_numbers = #tpu.dot_dimension_numbers<[1], [0], [0], [1], [0, 0, 1, 1], [], []>} : vector<128x72xbf16>, vector<72x8xbf16>, vector<128x8xf32> -> vector<128x8xf32>
    %c0_116 = arith.constant 0 : index
    %c0_117 = arith.constant 0 : index
    %74 = vector.load %arg5[%c0_116, %c0_117] : memref<1x8xf32, #tpu.memory_space<vmem>>, vector<1x8xf32>
    %c0_118 = arith.constant 0 : index
    %c0_119 = arith.constant 0 : index
    %75 = vector.load %arg6[%c0_118, %c0_119] : memref<1x8xf32, #tpu.memory_space<vmem>>, vector<1x8xf32>
    %cst_120 = arith.constant dense<0.000000e+00> : vector<8xf32>
    %76 = vector.multi_reduction <add>, %73, %cst_120 [0] : vector<128x8xf32> to vector<8xf32>
    %77 = vector.shape_cast %76 : vector<8xf32> to vector<1x8xf32>
    %cst_121 = arith.constant 1.280000e+02 : f32
    %78 = vector.broadcast %cst_121 : f32 to vector<1x8xf32>
    %79 = arith.divf %77, %78 : vector<1x8xf32>
    %80 = arith.mulf %73, %73 : vector<128x8xf32>
    %cst_122 = arith.constant dense<0.000000e+00> : vector<8xf32>
    %81 = vector.multi_reduction <add>, %80, %cst_122 [0] : vector<128x8xf32> to vector<8xf32>
    %82 = vector.shape_cast %81 : vector<8xf32> to vector<1x8xf32>
    %cst_123 = arith.constant 1.280000e+02 : f32
    %83 = vector.broadcast %cst_123 : f32 to vector<1x8xf32>
    %84 = arith.divf %82, %83 : vector<1x8xf32>
    %85 = arith.mulf %79, %79 : vector<1x8xf32>
    %86 = arith.subf %84, %85 : vector<1x8xf32>
    %cst_124 = arith.constant 0.000000e+00 : f32
    %87 = vector.broadcast %cst_124 : f32 to vector<1x8xf32>
    %88 = arith.maximumf %86, %87 : vector<1x8xf32>
    %cst_125 = arith.constant 9.99999974E-6 : f32
    %89 = vector.broadcast %cst_125 : f32 to vector<1x8xf32>
    %90 = arith.addf %88, %89 : vector<1x8xf32>
    %91 = math.rsqrt %90 : vector<1x8xf32>
    %92 = arith.mulf %74, %91 : vector<1x8xf32>
    %93 = vector.broadcast %92 : vector<1x8xf32> to vector<128x8xf32>
    %94 = arith.mulf %73, %93 : vector<128x8xf32>
    %95 = arith.mulf %79, %92 : vector<1x8xf32>
    %96 = arith.subf %75, %95 : vector<1x8xf32>
    %97 = vector.broadcast %96 : vector<1x8xf32> to vector<128x8xf32>
    %98 = arith.addf %94, %97 : vector<128x8xf32>
    %c0_126 = arith.constant 0 : index
    %c0_127 = arith.constant 0 : index
    %99 = vector.load %arg7[%c0_126, %c0_127] : memref<36x8xbf16, #tpu.memory_space<vmem>>, vector<36x8xbf16>
    %cst_128 = arith.constant dense<0.000000e+00> : vector<128x8xf32>
    %100 = tpu.matmul %20, %99, %cst_128 {dimension_numbers = #tpu.dot_dimension_numbers<[1], [0], [0], [1], [0, 0, 1, 1], [], []>} : vector<128x36xbf16>, vector<36x8xbf16>, vector<128x8xf32> -> vector<128x8xf32>
    %c0_129 = arith.constant 0 : index
    %c0_130 = arith.constant 0 : index
    %101 = vector.load %arg8[%c0_129, %c0_130] : memref<1x8xf32, #tpu.memory_space<vmem>>, vector<1x8xf32>
    %102 = vector.broadcast %101 : vector<1x8xf32> to vector<128x8xf32>
    %103 = arith.addf %100, %102 : vector<128x8xf32>
    %104 = arith.addf %98, %103 : vector<128x8xf32>
    %cst_131 = arith.constant 0.000000e+00 : f32
    %105 = vector.broadcast %cst_131 : f32 to vector<128x8xf32>
    %106 = arith.maximumf %104, %105 : vector<128x8xf32>
    %107 = vector.shape_cast %106 : vector<128x8xf32> to vector<2x8x8x8xf32>
    %c0_132 = arith.constant 0 : index
    %c0_133 = arith.constant 0 : index
    %c0_134 = arith.constant 0 : index
    %c0_135 = arith.constant 0 : index
    %108 = vector.load %arg9[%c0_132, %c0_133, %c0_134, %c0_135] : memref<2x8x8x8xf32, #tpu.memory_space<vmem>>, vector<2x8x8x8xf32>
    tpu.vector_store %arg9[%c0_132, %c0_133, %c0_134, %c0_135], %107 {strides = array<i32>} : memref<2x8x8x8xf32, #tpu.memory_space<vmem>>, vector<2x8x8x8xf32>,
    return
  }
}

</mosaic_0001>

<bundles_post_ra>
// kernel: tpu_custom_call.1
= control target key start
LH: loop header
LB: loop body
LE: loop exit
PB: predicated region body
PF: predicated region fallthrough
CT: control target
= control target key end

     0   :  { %s3459_s25 = smov 8   ;;  %s3460_s26 = smov 4   ;;  %vm884_vm0 = vcmask 1041408   ;;  %s4863_s0 = inlined_call_operand.vmem [shape: f32[4,2,9,9,4], index: 0, kind: input, shape index: {}]   ;;  %s4864_s1 = inlined_call_operand.vmem [shape: bf16[36,8], index: 1, kind: input, shape index: {}]   ;;  %s4865_s2 = inlined_call_operand.vmem [shape: f32[1,8], index: 2, kind: input, shape index: {}]   ;;  %s4866_s3 = inlined_call_operand.vmem [shape: f32[1,8], index: 3, kind: input, shape index: {}]   ;;  %s4867_s4 = inlined_call_operand.vmem [shape: bf16[72,8], index: 4, kind: input, shape index: {}]   ;;  %s4868_s5 = inlined_call_operand.vmem [shape: f32[1,8], index: 5, kind: input, shape index: {}]   ;;  %s4869_s6 = inlined_call_operand.vmem [shape: f32[1,8], index: 6, kind: input, shape index: {}]   ;;  %s4870_s7 = inlined_call_operand.vmem [shape: bf16[36,8], index: 7, kind: input, shape index: {}]   ;;  %s4871_s8 = inlined_call_operand.vmem [shape: f32[1,8], index: 8, kind: input, shape index: {}]   ;;  %s4872_s9 = inlined_call_operand.hbm [shape: f32[2,8,8,8], index: 9, kind: output, shape index: {}]  }
   0x1   :  { %v67_v0 = vld [vmem:[%s4863_s0 + $0x1] sm:$0xff]  ;;  %v3530_v1 = vld [vmem:[%s4863_s0 + $0x11] sm:$0xff]  ;;  %s3461_s22 = smov 12   ;;  %s3462_s12 = smov 16  }
   0x2   :  { %v2504_v2 = vld [vmem:[%s4863_s0 + $0x120] sm:$0xff]  ;;  %v2792_v3 = vpack.i.bf16 %v3530_v1, %v67_v0  ;;  %v2505_v4 = vld [vmem:[%s4863_s0 + $0x130] sm:$0xff]  ;;  %s3463_s21 = smov 20   ;;  %s3464_s27 = smov 24   ;;  %v3423_v53 = vld [vmem:[%s4864_s1 + $0x8] sm:$0xff]  }
   0x3   :  { %v3542_v5 = vld [vmem:[%s4863_s0 + $0x21] sm:$0xff]  ;;  %v3547_v6 = vld [vmem:[%s4863_s0 + $0x31] sm:$0xff]  ;;  %v2782_v7 = vpack.i.bf16 %v2505_v4, %v2504_v2  ;;  %s3465_s30 = smov 28   ;;  %s3466_s17 = smov 32  }
   0x4   :  { %v2506_v8 = vld [vmem:[%s4863_s0 + $0x140] sm:$0xff]  ;;  %v2507_v9 = vld [vmem:[%s4863_s0 + $0x150] sm:$0xff]  ;;  %2793 = vrot.lane.b32.xlu1 %v2792_v3, %s3459_s25  ;;  %v2797_v10 = vpack.i.bf16 %v3547_v6, %v3542_v5  ;;  %v2852_v41 = vpack.i.bf16 %v3542_v5, %v3530_v1 }
   0x5   :  { %2783 = vrot.lane.b32.xlu0 %v2782_v7, %s3460_s26  ;;  %v2787_v11 = vpack.i.bf16 %v2507_v9, %v2506_v8  ;;  %v2522_v12 = vld [vmem:[%s4863_s0 + $0x260] sm:$0xff]  ;;  %v2523_v13 = vld [vmem:[%s4863_s0 + $0x270] sm:$0xff]  ;;  %v2842_v38 = vpack.i.bf16 %v2506_v8, %v2505_v4 }
   0x6   :  { %v2520_v14 = vld [vmem:[%s4863_s0 + $0x240] sm:$0xff]  ;;  %v2521_v15 = vld [vmem:[%s4863_s0 + $0x250] sm:$0xff]  ;;  %v2807_v16 = vpack.i.bf16 %v2523_v13, %v2522_v12 }
   0x7   :  { %v2802_v17 = vpack.i.bf16 %v2521_v15, %v2520_v14  ;;  %v2538_v18 = vld [vmem:[%s4863_s0 + $0x380] sm:$0xff]  ;;  %v2539_v19 = vld [vmem:[%s4863_s0 + $0x390] sm:$0xff] }
   0x8   :  { %2798 = vrot.lane.b32.xlu1 %v2797_v10, %s3459_s25  ;;  %v2536_v20 = vld [vmem:[%s4863_s0 + $0x360] sm:$0xff]  ;;  %v2537_v21 = vld [vmem:[%s4863_s0 + $0x370] sm:$0xff]  ;;  %v2817_v22 = vpack.i.bf16 %v2539_v19, %v2538_v18 }
   0x9   :  { %2788 = vrot.lane.b32.xlu0 %v2787_v11, %s3460_s26  ;;  %v2812_v23 = vpack.i.bf16 %v2537_v21, %v2536_v20  ;;  %v2554_v24 = vld [vmem:[%s4863_s0 + $0x261] sm:$0xff]  ;;  %v2555_v25 = vld [vmem:[%s4863_s0 + $0x271] sm:$0xff]  ;;  %v3422_v52 = vld [vmem:[%s4864_s1 + $0x10] ss:$0 sps:$4 sm:$0x33]  }
   0xa   :  { %v2552_v26 = vld [vmem:[%s4863_s0 + $0x241] sm:$0xff]  ;;  %v2553_v27 = vld [vmem:[%s4863_s0 + $0x251] sm:$0xff]  ;;  %v2827_v28 = vpack.i.bf16 %v2555_v25, %v2554_v24  ;;  %2763 = vmatprep.subr.msk.bf16.mxu0 %vm884_vm0, %v3422_v52  ;;  %v886_v58 = vsel %vm884_vm0, %v3422_v52, 0  ;;  %2764 = vmatprep.subr.msk.bf16.mxu1 %vm884_vm0, %v3422_v52 }
   0xb   :  { %v2822_v29 = vpack.i.bf16 %v2553_v27, %v2552_v26  ;;  %v3604_v30 = vld [vmem:[%s4863_s0 + $0x30] sm:$0xff]  ;;  %v3609_v31 = vld [vmem:[%s4863_s0 + $0x40] sm:$0xff]  ;;  %2688 = vmatpush3.bf16.msra.mxu0 %v886_v58  ;;  %2760 = vmatpush3.bf16.msra.mxu1 %v886_v58 }
   0xc   :  { %2808 = vrot.lane.b32.xlu1 %v2807_v16, %s3461_s22  ;;  %v3614_v32 = vld [vmem:[%s4863_s0 + $0x10] sm:$0xff]  ;;  %v3619_v33 = vld [vmem:[%s4863_s0 + $0x20] sm:$0xff]  ;;  %v2837_v34 = vpack.i.bf16 %v3609_v31, %v3604_v30  ;;  %2689 = vmatprep.subr.bf16.mxu0 %v3423_v53 }
   0xd   :  { %2803 = vrot.lane.b32.xlu0 %v2802_v17, %s3461_s22  ;;  %v2832_v35 = vpack.i.bf16 %v3619_v33, %v3614_v32  ;;  %v2587_v36 = vld [vmem:[%s4863_s0 + $0x160] sm:$0xff]  ;;  %v3635_v39 = vld [vmem:[%s4863_s0 + $0x170] sm:$0xff]  ;;  %2758 = vmatprep.subr.bf16.mxu1 %v3423_v53 }
   0xe   :  { %v2847_v37 = vpack.i.bf16 %v2587_v36, %v2507_v9  ;;  %v2857_v40 = vpack.i.bf16 %v3635_v39, %v2587_v36  ;;  %v3645_v42 = vld [vmem:[%s4863_s0 + $0x180] sm:$0xff]  ;;  %v3650_v43 = vld [vmem:[%s4863_s0 + $0x190] sm:$0xff] }
   0xf   :  { %v2603_v44 = vld [vmem:[%s4863_s0 + $0x41] sm:$0xff]  ;;  %v2867_v45 = vpack.i.bf16 %v3650_v43, %v3645_v42  ;;  %v3668_v48 = vld [vmem:[%s4863_s0 + $0x71] sm:$0xff]  ;;  %2690 = vmatpush3.bf16.msra.mxu0 %v3423_v53 }
  0x10   :  { %2818 = vrot.lane.b32.xlu1 %v2817_v22, %s3462_s12  ;;  %v2862_v46 = vpack.i.bf16 %v2603_v44, %v3547_v6  ;;  %v3663_v47 = vld [vmem:[%s4863_s0 + $0x61] sm:$0xff]  ;;  %v3673_v49 = vld [vmem:[%s4863_s0 + $0x51] sm:$0xff] }
  0x11   :  { %2813 = vrot.lane.b32.xlu0 %v2812_v23, %s3462_s12  ;;  %v2526_v50 = vld [vmem:[%s4863_s0 + $0x2a0] sm:$0xff]  ;;  %v2527_v51 = vld [vmem:[%s4863_s0 + $0x2b0] sm:$0xff]  ;;  %v2877_v54 = vpack.i.bf16 %v3668_v48, %v3663_v47  ;;  %v2872_v57 = vpack.i.bf16 %v3673_v49, %v2603_v44 }
  0x12   :  { %v2524_v55 = vld [vmem:[%s4863_s0 + $0x280] sm:$0xff]  ;;  %v2525_v56 = vld [vmem:[%s4863_s0 + $0x290] sm:$0xff]  ;;  %v2887_v62 = vpack.i.bf16 %v2527_v51, %v2526_v50 }
  0x13   :  { %v3424_v59 = vld [vmem:[%s4864_s1] sm:$0xff]   ;;  %v2543_v61 = vld [vmem:[%s4863_s0 + $0x3d0] sm:$0xff]  ;;  %v2882_v63 = vpack.i.bf16 %v2525_v56, %v2524_v55 }
  0x14   :  { %2828 = vrot.lane.b32.xlu1 %v2827_v28, %s3463_s21  ;;  %v2542_v60 = vld [vmem:[%s4863_s0 + $0x3c0] sm:$0xff]  ;;  %v2541_v1 = vld [vmem:[%s4863_s0 + $0x3b0] sm:$0xff] }
  0x15   :  { %2823 = vrot.lane.b32.xlu0 %v2822_v29, %s3463_s21  ;;  %v2540_v0 = vld [vmem:[%s4863_s0 + $0x3a0] sm:$0xff] }
  0x18   :  { %2838 = vrot.lane.b32.xlu1 %v2837_v34, %s3464_s27 }
  0x19   :  { %2833 = vrot.lane.b32.xlu0 %v2832_v35, %s3464_s27 }
  0x1c   :  { %2848 = vrot.lane.b32.xlu1 %v2847_v37, %s3465_s30 }
  0x1d   :  { %2843 = vrot.lane.b32.xlu0 %v2842_v38, %s3465_s30 }
  0x20   :  { %2858 = vrot.lane.b32.xlu1 %v2857_v40, %s3460_s26 }
  0x21   :  { %2853 = vrot.lane.b32.xlu0 %v2852_v41, %s3466_s17 }
  0x24   :  { %2868 = vrot.lane.b32.xlu1 %v2867_v45, %s3460_s26 }
  0x25   :  { %2863 = vrot.lane.b32.xlu0 %v2862_v46, %s3466_s17 }
  0x28   :  { %2878 = vrot.lane.b32.xlu1 %v2877_v54, %s3459_s25 }
  0x29   :  { %2873 = vrot.lane.b32.xlu0 %v2872_v57, %s3459_s25 }
  0x2a   :  { %14 = vsyncpa [#allocation4], 0  ;;  %2691 = vmatprep.subr.bf16.mxu0 %v3424_v59  ;;  %2761 = vmatpush3.bf16.msra.mxu1 %v3423_v53  ;;  %v2897_v2 = vpack.i.bf16 %v2543_v61, %v2542_v60  ;;  %v2892_v3 = vpack.i.bf16 %v2541_v1, %v2540_v0  ;;  %v2558_v4 = vld [vmem:[%s4863_s0 + $0x2a1] sm:$0xff]  ;;  %v2559_v5 = vld [vmem:[%s4863_s0 + $0x2b1] sm:$0xff]  ;;  %v2922_v19 = vpack.i.bf16 %v3645_v42, %v3635_v39  ;;  %vm695_vm1 = vcmask 31744   ;;  %s3468_s20 = smov 40  }
  0x2b   :  { %2759 = vmatprep.subr.bf16.mxu1 %v3424_v59  ;;  %v2556_v6 = vld [vmem:[%s4863_s0 + $0x281] sm:$0xff]  ;;  %v2557_v7 = vld [vmem:[%s4863_s0 + $0x291] sm:$0xff]  ;;  %2692 = vmatpush3.bf16.msra.mxu0 %v3424_v59  ;;  %v2907_v8 = vpack.i.bf16 %v2559_v5, %v2558_v4  ;;  %v3425_v17 = vld [vmem:[%s4870_s7 + $0x10] ss:$0 sps:$4 sm:$0x33]   ;;  %v2932_v24 = vpack.i.bf16 %v3663_v47, %v3673_v49  ;;  %vm712_vm2 = vcmask 64512  }
  0x2c   :  { %2888 = vrot.lane.b32.xlu1 %v2887_v62, %s3461_s22  ;;  %v2902_v9 = vpack.i.bf16 %v2557_v7, %v2556_v6  ;;  %v3737_v10 = vld [vmem:[%s4863_s0 + $0x70] sm:$0xff]  ;;  %v2575_v11 = vld [vmem:[%s4863_s0 + $0x80] sm:$0xff]  ;;  %2766 = vmatprep.subr.msk.bf16.mxu0 %vm884_vm0, %v3425_v17  ;;  %v3776_v22 = vsel %vm884_vm0, %v3425_v17, 0  ;;  %vm729_vm3 = vcmask 97280   ;;  %vm746_vm4 = vcmask 130048   ;;  %s3469_s28 = smov 48  }
  0x2d   :  { %2883 = vrot.lane.b32.xlu0 %v2882_v63, %s3461_s22  ;;  %v3745_v12 = vld [vmem:[%s4863_s0 + $0x50] sm:$0xff]  ;;  %v3750_v13 = vld [vmem:[%s4863_s0 + $0x60] sm:$0xff]  ;;  %v2917_v14 = vpack.i.bf16 %v2575_v11, %v3737_v10  ;;  %vm763_vm5 = vcmask 162816   ;;  %vm780_vm6 = vcmask 195584   ;;  %vm797_vm7 = vcmask 228352   ;;  %s3471_s13 = smov 64  }
  0x2e   :  { %2762 = vmatpush3.bf16.msra.mxu1 %v3424_v59  ;;  %v2912_v15 = vpack.i.bf16 %v3750_v13, %v3745_v12  ;;  %v2591_v16 = vld [vmem:[%s4863_s0 + $0x1a0] sm:$0xff]  ;;  %v2512_v20 = vld [vmem:[%s4863_s0 + $0x1b0] sm:$0xff]  ;;  %vm814_vm8 = vcmask 261120   ;;  %vm859_vm9 = vcmask 293888   ;;  %vm1149_vm10 = vcmask 58368  }
  0x2f   :  { %v2927_v18 = vpack.i.bf16 %v2591_v16, %v3650_v43  ;;  %v2513_v21 = vld [vmem:[%s4863_s0 + $0x1c0] sm:$0xff]  ;;  %v2514_v25 = vld [vmem:[%s4863_s0 + $0x1d0] sm:$0xff]  ;;  %vm1159_vm11 = vcmask 57344   ;;  %vm2066_vm12 = vcmask 1043456   ;;  %vm1929_vm13 = vcmask 326656  }
  0x30   :  { %2898 = vrot.lane.b32.xlu1 %v2897_v2, %s3462_s12  ;;  %v2937_v23 = vpack.i.bf16 %v2513_v21, %v2512_v20  ;;  %v2515_v26 = vld [vmem:[%s4863_s0 + $0x1e0] sm:$0xff]  ;;  %v77_v34 = vld [vmem:[%s4863_s0 + $0xb1] sm:$0xff]  ;;  %v3002_v2 = vpack.i.bf16 %v2514_v25, %v2513_v21  ;;  %vm1946_vm14 = vcmask 392192   ;;  %vm1963_vm15 = vcmask 457728  }
  0x31   :  { %2893 = vrot.lane.b32.xlu0 %v2892_v3, %s3462_s12  ;;  %v2607_v27 = vld [vmem:[%s4863_s0 + $0x81] sm:$0xff]  ;;  %v2947_v28 = vpack.i.bf16 %v2515_v26, %v2514_v25  ;;  %v75_v36 = vld [vmem:[%s4863_s0 + $0x91] sm:$0xff]  ;;  %vm1980_vm0 = vcmask 523264  }
  0x32   :  { %v2942_v29 = vpack.i.bf16 %v2607_v27, %v3668_v48  ;;  %v78_v35 = vld [vmem:[%s4863_s0 + $0xc1] sm:$0xff]  ;;  %v2530_v40 = vld [vmem:[%s4863_s0 + $0x2f0] sm:$0xff] }
  0x33   :  { %v76_v37 = vld [vmem:[%s4863_s0 + $0xa1] sm:$0xff]  ;;  %v2957_v38 = vpack.i.bf16 %v78_v35, %v77_v34  ;;  %v2528_v42 = vld [vmem:[%s4863_s0 + $0x2d0] sm:$0xff] }
  0x34   :  { %2908 = vrot.lane.b32.xlu1 %v2907_v8, %s3463_s21  ;;  %v2952_v39 = vpack.i.bf16 %v76_v37, %v75_v36  ;;  %v2531_v41 = vld [vmem:[%s4863_s0 + $0x300] sm:$0xff]  ;;  %v2546_v46 = vld [vmem:[%s4863_s0 + $0x410] sm:$0xff]  ;;  %v3012_v5 = vpack.i.bf16 %v77_v34, %v76_v37 }
  0x35   :  { %2903 = vrot.lane.b32.xlu0 %v2902_v9, %s3463_s21  ;;  %v2529_v43 = vld [vmem:[%s4863_s0 + $0x2e0] sm:$0xff]  ;;  %v2967_v44 = vpack.i.bf16 %v2531_v41, %v2530_v40  ;;  %v2544_v48 = vld [vmem:[%s4863_s0 + $0x3f0] sm:$0xff] }
  0x36   :  { %v2962_v45 = vpack.i.bf16 %v2529_v43, %v2528_v42  ;;  %v2547_v47 = vld [vmem:[%s4863_s0 + $0x420] sm:$0xff]  ;;  %v2562_v52 = vld [vmem:[%s4863_s0 + $0x2f1] sm:$0xff] }
  0x37   :  { %v2545_v49 = vld [vmem:[%s4863_s0 + $0x400] sm:$0xff]  ;;  %v2977_v50 = vpack.i.bf16 %v2547_v47, %v2546_v46  ;;  %v2560_v54 = vld [vmem:[%s4863_s0 + $0x2d1] sm:$0xff] }
  0x38   :  { %2918 = vrot.lane.b32.xlu1 %v2917_v14, %s3464_s27  ;;  %v2972_v51 = vpack.i.bf16 %v2545_v49, %v2544_v48  ;;  %v2563_v53 = vld [vmem:[%s4863_s0 + $0x301] sm:$0xff]  ;;  %v3858_v59 = vld [vmem:[%s4863_s0 + $0xd0] sm:$0xff] }
  0x39   :  { %2913 = vrot.lane.b32.xlu0 %v2912_v15, %s3464_s27  ;;  %v2561_v55 = vld [vmem:[%s4863_s0 + $0x2e1] sm:$0xff]  ;;  %v2987_v56 = vpack.i.bf16 %v2563_v53, %v2562_v52  ;;  %v3868_v61 = vld [vmem:[%s4863_s0 + $0xb0] sm:$0xff] }
  0x3a   :  { %v2982_v57 = vpack.i.bf16 %v2561_v55, %v2560_v54  ;;  %v3853_v58 = vld [vmem:[%s4863_s0 + $0xc0] sm:$0xff]  ;;  %v2595_v0 = vld [vmem:[%s4863_s0 + $0x1f0] sm:$0xff] }
  0x3b   :  { %v3863_v60 = vld [vmem:[%s4863_s0 + $0xa0] sm:$0xff]  ;;  %v2997_v62 = vpack.i.bf16 %v3858_v59, %v3853_v58  ;;  %v3007_v1 = vpack.i.bf16 %v2595_v0, %v2515_v26  ;;  %v2518_v6 = vld [vmem:[%s4863_s0 + $0x210] sm:$0xff] }
  0x3c   :  { %2928 = vrot.lane.b32.xlu1 %v2927_v18, %s3465_s30  ;;  %v2992_v63 = vpack.i.bf16 %v3868_v61, %v3863_v60  ;;  %v3884_v3 = vld [vmem:[%s4863_s0 + $0x200] sm:$0xff]  ;;  %v2611_v8 = vld [vmem:[%s4863_s0 + $0xd1] sm:$0xff] }
  0x3d   :  { %2923 = vrot.lane.b32.xlu0 %v2922_v19, %s3465_s30  ;;  %v3017_v4 = vpack.i.bf16 %v3884_v3, %v2595_v0  ;;  %v2519_v7 = vld [vmem:[%s4863_s0 + $0x220] sm:$0xff]  ;;  %v3022_v11 = vpack.i.bf16 %v2611_v8, %v78_v35  ;;  %v81_v14 = vld [vmem:[%s4863_s0 + $0xf1] sm:$0xff]  ;;  %v3082_v52 = vpack.i.bf16 %v2518_v6, %v3884_v3 }
  0x3e   :  { %v3027_v9 = vpack.i.bf16 %v2519_v7, %v2518_v6  ;;  %v82_v15 = vld [vmem:[%s4863_s0 + $0x101] sm:$0xff]  ;;  %v2534_v19 = vld [vmem:[%s4863_s0 + $0x330] sm:$0xff] }
  0x3f   :  { %v80_v16 = vld [vmem:[%s4863_s0 + $0xe1] sm:$0xff]  ;;  %v3037_v17 = vpack.i.bf16 %v82_v15, %v81_v14  ;;  %v2532_v21 = vld [vmem:[%s4863_s0 + $0x310] sm:$0xff] }
  0x40   :  { %2938 = vrot.lane.b32.xlu1 %v2937_v23, %s3460_s26  ;;  %v3032_v18 = vpack.i.bf16 %v80_v16, %v2611_v8  ;;  %v2535_v20 = vld [vmem:[%s4863_s0 + $0x340] sm:$0xff]  ;;  %v2550_v26 = vld [vmem:[%s4863_s0 + $0x450] sm:$0xff] }
  0x41   :  { %2933 = vrot.lane.b32.xlu0 %v2932_v24, %s3466_s17  ;;  %v2533_v23 = vld [vmem:[%s4863_s0 + $0x320] sm:$0xff]  ;;  %v3047_v24 = vpack.i.bf16 %v2535_v20, %v2534_v19  ;;  %v2566_v36 = vld [vmem:[%s4863_s0 + $0x331] sm:$0xff] }
  0x42   :  { %v3042_v25 = vpack.i.bf16 %v2533_v23, %v2532_v21  ;;  %v2551_v27 = vld [vmem:[%s4863_s0 + $0x460] sm:$0xff]  ;;  %v2583_v43 = vld [vmem:[%s4863_s0 + $0x110] sm:$0xff] }
  0x43   :  { %v3057_v34 = vpack.i.bf16 %v2551_v27, %v2550_v26  ;;  %v2567_v37 = vld [vmem:[%s4863_s0 + $0x341] sm:$0xff]  ;;  %v2599_v48 = vld [vmem:[%s4863_s0 + $0x230] sm:$0xff] }
  0x44   :  { %2948 = vrot.lane.b32.xlu1 %v2947_v28, %s3460_s26  ;;  %v2548_v28 = vld [vmem:[%s4863_s0 + $0x430] sm:$0xff]  ;;  %v3067_v40 = vpack.i.bf16 %v2567_v37, %v2566_v36  ;;  %v3956_v42 = vld [vmem:[%s4863_s0 + $0x100] sm:$0xff] }
  0x45   :  { %2943 = vrot.lane.b32.xlu0 %v2942_v29, %s3466_s17  ;;  %v2549_v29 = vld [vmem:[%s4863_s0 + $0x440] sm:$0xff]  ;;  %v3077_v46 = vpack.i.bf16 %v2583_v43, %v3956_v42  ;;  %v2615_v53 = vld [vmem:[%s4863_s0 + $0x111] sm:$0xff] }
  0x46   :  { %v3052_v35 = vpack.i.bf16 %v2549_v29, %v2548_v28 }
  0x48   :  { %2958 = vrot.lane.b32.xlu1 %v2957_v38, %s3459_s25  ;;  %v2564_v38 = vld [vmem:[%s4863_s0 + $0x311] sm:$0xff] }
  0x49   :  { %2953 = vrot.lane.b32.xlu0 %v2952_v39, %s3459_s25  ;;  %v2565_v39 = vld [vmem:[%s4863_s0 + $0x321] sm:$0xff] }
  0x4a   :  { %v3062_v41 = vpack.i.bf16 %v2565_v39, %v2564_v38 }
  0x4c   :  { %2968 = vrot.lane.b32.xlu1 %v2967_v44, %s3461_s22  ;;  %v3964_v44 = vld [vmem:[%s4863_s0 + $0xe0] sm:$0xff] }
  0x4d   :  { %2963 = vrot.lane.b32.xlu0 %v2962_v45, %s3461_s22  ;;  %v3969_v45 = vld [vmem:[%s4863_s0 + $0xf0] sm:$0xff] }
  0x4e   :  { %v3072_v47 = vpack.i.bf16 %v3969_v45, %v3964_v44 }
  0x50   :  { %2978 = vrot.lane.b32.xlu1 %v2977_v50, %s3462_s12 }
  0x51   :  { %2973 = vrot.lane.b32.xlu0 %v2972_v51, %s3462_s12  ;;  %v3087_v51 = vpack.i.bf16 %v2599_v48, %v2519_v7 }
  0x54   :  { %2988 = vrot.lane.b32.xlu1 %v2987_v56, %s3463_s21  ;;  %v3097_v56 = vpack.i.bf16 %v2615_v53, %v82_v15 }
  0x55   :  { %2983 = vrot.lane.b32.xlu0 %v2982_v57, %s3463_s21  ;;  %v3092_v57 = vpack.i.bf16 %v81_v14, %v80_v16 }
  0x58   :  { %2998 = vrot.lane.b32.xlu1 %v2997_v62, %s3464_s27 }
  0x59   :  { %2993 = vrot.lane.b32.xlu0 %v2992_v63, %s3464_s27 }
  0x5c   :  { %3008 = vrot.lane.b32.xlu1 %v3007_v1, %s3465_s30 }
  0x5d   :  { %3003 = vrot.lane.b32.xlu0 %v3002_v2, %s3465_s30 }
  0x60   :  { %3018 = vrot.lane.b32.xlu1 %v3017_v4, %s3460_s26 }
  0x61   :  { %3013 = vrot.lane.b32.xlu0 %v3012_v5, %s3466_s17  ;;  %v34_v5 = vld [vmem:[%s4863_s0] sm:$0xff] }
  0x64   :  { %3028 = vrot.lane.b32.xlu1 %v3027_v9, %s3460_s26 }
  0x65   :  { %3023 = vrot.lane.b32.xlu0 %v3022_v11, %s3466_s17 }
  0x68   :  { %3038 = vrot.lane.b32.xlu1 %v3037_v17, %s3459_s25 }
  0x69   :  { %3033 = vrot.lane.b32.xlu0 %v3032_v18, %s3459_s25 }
  0x6c   :  { %3048 = vrot.lane.b32.xlu1 %v3047_v24, %s3461_s22 }
  0x6d   :  { %3043 = vrot.lane.b32.xlu0 %v3042_v25, %s3461_s22 }
  0x70   :  { %3058 = vrot.lane.b32.xlu1 %v3057_v34, %s3462_s12 }
  0x71   :  { %3053 = vrot.lane.b32.xlu0 %v3052_v35, %s3462_s12 }
  0x74   :  { %3068 = vrot.lane.b32.xlu1 %v3067_v40, %s3463_s21 }
  0x75   :  { %3063 = vrot.lane.b32.xlu0 %v3062_v41, %s3463_s21  ;;  %s3470_s21 = smov 56  }
  0x76   :  { %v2794_v49 = vpop.permute.xlu1 %2793 }
  0x77   :  { %v2784_v50 = vpop.permute.xlu0 %2783  ;;  %v2796_v9 = vunpack.i.h.bf16 %v2794_v49  ;;  %v2795_v11 = vunpack.i.l.bf16 %v2794_v49 }
  0x78   :  { %3078 = vrot.lane.b32.xlu1 %v3077_v46, %s3464_s27  ;;  %v2786_v2 = vunpack.i.h.bf16 %v2784_v50  ;;  %v2785_v3 = vunpack.i.l.bf16 %v2784_v50 }
  0x79   :  { %3073 = vrot.lane.b32.xlu0 %v3072_v47, %s3464_s27 }
  0x7a   :  { %v2799_v54 = vpop.permute.xlu1 %2798  ;;  %v696_v14 = vsel %vm695_vm1, %v34_v5, %v2785_v3  ;;  %v697_v15 = vsel %vm695_vm1, %v3614_v32, %v2786_v2 }
  0x7b   :  { %v2789_v55 = vpop.permute.xlu0 %2788  ;;  %v2801_v16 = vunpack.i.h.bf16 %v2799_v54  ;;  %v2800_v17 = vunpack.i.l.bf16 %v2799_v54  ;;  %v713_v27 = vsel %vm712_vm2, %v696_v14, %v2795_v11  ;;  %v714_v32 = vsel %vm712_vm2, %v697_v15, %v2796_v9 }
  0x7c   :  { %3088 = vrot.lane.b32.xlu1 %v3087_v51, %s3465_s30  ;;  %v2791_v6 = vunpack.i.h.bf16 %v2789_v55  ;;  %v2790_v7 = vunpack.i.l.bf16 %v2789_v55 }
  0x7d   :  { %3083 = vrot.lane.b32.xlu0 %v3082_v52, %s3465_s30 }
  0x7e   :  { %v2809_v62 = vpop.permute.xlu1 %2808  ;;  %v698_v19 = vsel %vm695_vm1, %v3619_v33, %v2790_v7  ;;  %v699_v20 = vsel %vm695_vm1, %v3604_v30, %v2791_v6 }
  0x7f   :  { %v2804_v63 = vpop.permute.xlu0 %2803  ;;  %v2811_v21 = vunpack.i.h.bf16 %v2809_v62  ;;  %v2810_v23 = vunpack.i.l.bf16 %v2809_v62  ;;  %v715_v28 = vsel %vm712_vm2, %v698_v19, %v2800_v17  ;;  %v716_v33 = vsel %vm712_vm2, %v699_v20, %v2801_v16 }
  0x80   :  { %3098 = vrot.lane.b32.xlu1 %v3097_v56, %s3466_s17  ;;  %v2806_v25 = vunpack.i.h.bf16 %v2804_v63  ;;  %v2805_v26 = vunpack.i.l.bf16 %v2804_v63 }
  0x81   :  { %3093 = vrot.lane.b32.xlu0 %v3092_v57, %s3466_s17  ;;  %v732_v35 = vsel %vm729_vm3, %v715_v28, %v2810_v23  ;;  %v733_v36 = vsel %vm729_vm3, %v716_v33, %v2811_v21 }
  0x82   :  { %v3989_v0 = vpop.permute.xlu1 %2818  ;;  %v730_v40 = vsel %vm729_vm3, %v713_v27, %v2805_v26  ;;  %v731_v41 = vsel %vm729_vm3, %v714_v32, %v2806_v25 }
  0x83   :  { %v2814_v1 = vpop.permute.xlu0 %2813  ;;  %v2821_v47 = vunpack.i.h.bf16 %v3989_v0  ;;  %v2820_v48 = vunpack.i.l.bf16 %v3989_v0 }
  0x84   :  { %v2816_v29 = vunpack.i.h.bf16 %v2814_v1  ;;  %v2815_v34 = vunpack.i.l.bf16 %v2814_v1 }
  0x85   :  { %v749_v9 = vsel %vm746_vm4, %v732_v35, %v2820_v48  ;;  %v750_v11 = vsel %vm746_vm4, %v733_v36, %v2821_v47 }
  0x86   :  { %v3991_v4 = vpop.permute.xlu1 %2828  ;;  %v747_v51 = vsel %vm746_vm4, %v730_v40, %v2815_v34  ;;  %v748_v52 = vsel %vm746_vm4, %v731_v41, %v2816_v29 }
  0x87   :  { %v2824_v8 = vpop.permute.xlu0 %2823  ;;  %v2831_v53 = vunpack.i.h.bf16 %v3991_v4  ;;  %v2830_v54 = vunpack.i.l.bf16 %v3991_v4 }
  0x88   :  { %v2826_v37 = vunpack.i.h.bf16 %v2824_v8  ;;  %v2825_v38 = vunpack.i.l.bf16 %v2824_v8 }
  0x89   :  { %v766_v17 = vsel %vm763_vm5, %v749_v9, %v2830_v54 }
  0x8a   :  { %v3999_v18 = vpop.permute.xlu1 %2838  ;;  %v764_v56 = vsel %vm763_vm5, %v747_v51, %v2825_v38  ;;  %v765_v57 = vsel %vm763_vm5, %v748_v52, %v2826_v37  ;;  %v3427_v37 = vld [vmem:[%s4870_s7] sm:$0xff]  }
  0x8b   :  { %v2834_v24 = vpop.permute.xlu0 %2833  ;;  %v2841_v62 = vunpack.i.h.bf16 %v3999_v18  ;;  %v2840_v63 = vunpack.i.l.bf16 %v3999_v18  ;;  %v767_v18 = vsel %vm763_vm5, %v750_v11, %v2831_v53 }
  0x8c   :  { %v2836_v43 = vunpack.i.h.bf16 %v2834_v24  ;;  %v2835_v46 = vunpack.i.l.bf16 %v2834_v24 }
  0x8d   :  { %v783_v21 = vsel %vm780_vm6, %v766_v17, %v2840_v63  ;;  %v784_v23 = vsel %vm780_vm6, %v767_v18, %v2841_v62 }
  0x8e   :  { %v2849_v30 = vpop.permute.xlu1 %2848  ;;  %v781_v3 = vsel %vm780_vm6, %v764_v56, %v2835_v46  ;;  %v782_v5 = vsel %vm780_vm6, %v765_v57, %v2836_v43 }
  0x8f   :  { %v2844_v39 = vpop.permute.xlu0 %2843  ;;  %v2851_v6 = vunpack.i.h.bf16 %v2849_v30  ;;  %v2850_v7 = vunpack.i.l.bf16 %v2849_v30  ;;  %v3426_v30 = vld [vmem:[%s4870_s7 + $0x8] sm:$0xff]  }
  0x90   :  { %v2846_v49 = vunpack.i.h.bf16 %v2844_v39  ;;  %v2845_v50 = vunpack.i.l.bf16 %v2844_v39 }
  0x91   :  { %v800_v26 = vsel %vm797_vm7, %v783_v21, %v2850_v7  ;;  %v801_v27 = vsel %vm797_vm7, %v784_v23, %v2851_v6 }
  0x92   :  { %v4019_v55 = vpop.permute.xlu1 %2858  ;;  %v798_v4 = vsel %vm797_vm7, %v781_v3, %v2845_v50  ;;  %v799_v8 = vsel %vm797_vm7, %v782_v5, %v2846_v49 }
  0x93   :  { %v2854_v0 = vpop.permute.xlu0 %2853  ;;  %v2861_v47 = vunpack.i.h.bf16 %v4019_v55 }
  0x94   :  { %v2856_v1 = vunpack.i.h.bf16 %v2854_v0  ;;  %v2855_v2 = vunpack.i.l.bf16 %v2854_v0 }
  0x96   :  { %v2869_v14 = vpop.permute.xlu1 %2868  ;;  %v815_v15 = vsel %vm814_vm8, %v798_v4, %v2855_v2  ;;  %v816_v16 = vsel %vm814_vm8, %v799_v8, %v2856_v1 }
  0x97   :  { %v2864_v19 = vpop.permute.xlu0 %2863  ;;  %v4035_v20 = vpack.c.bf16 %v816_v16, %v815_v15  ;;  %v2871_v43 = vunpack.i.h.bf16 %v2869_v14  ;;  %v2870_v46 = vunpack.i.l.bf16 %v2869_v14 }
  0x98   :  { %v2866_v24 = vunpack.i.h.bf16 %v2864_v19  ;;  %v2865_v25 = vunpack.i.l.bf16 %v2864_v19 }
  0x99   :  { %2693 = vmatprep.mubr.msk.bf16.mxu0 %vm859_vm9, %v4035_v20  ;;  %v702_v57 = vsel %vm695_vm1, %v3750_v13, %v2870_v46  ;;  %v703_v62 = vsel %vm695_vm1, %v3737_v10, %v2871_v43 }
  0x9a   :  { %v817_v32 = vsel %vm814_vm8, %v800_v26, %v2865_v25  ;;  %v818_v28 = vsel %vm814_vm8, %v801_v27, %v2866_v24  ;;  %v2879_v33 = vpop.permute.xlu1 %2878 }
  0x9b   :  { %v2874_v29 = vpop.permute.xlu0 %2873  ;;  %v4045_v34 = vpack.c.bf16 %v818_v28, %v817_v32  ;;  %v2881_v48 = vunpack.i.h.bf16 %v2879_v33  ;;  %v2880_v49 = vunpack.i.l.bf16 %v2879_v33 }
  0x9c   :  { %v2876_v50 = vunpack.i.h.bf16 %v2874_v29  ;;  %v2875_v51 = vunpack.i.l.bf16 %v2874_v29 }
  0x9d   :  { %2694 = vmatmul.mubr.msk.bf16.vlgmr.msra.gmra.mxu0 %vm859_vm9, %v4045_v34  ;;  %v719_v2 = vsel %vm712_vm2, %v702_v57, %v2880_v49  ;;  %v720_v3 = vsel %vm712_vm2, %v703_v62, %v2881_v48 }
  0x9e   :  { %v2889_v35 = vpop.permute.xlu1 %2888  ;;  %2736 = vmatpush3.bf16.msra.mxu0 %v3776_v22  ;;  %v2860_v22 = vunpack.i.l.bf16 %v4019_v55  ;;  %v701_v55 = vsel %vm695_vm1, %v3745_v12, %v2861_v47 }
  0x9f   :  { %v2884_v36 = vpop.permute.xlu0 %2883  ;;  %2737 = vmatprep.subr.bf16.mxu0 %v3426_v30  ;;  %v2891_v53 = vunpack.i.h.bf16 %v2889_v35  ;;  %v2890_v54 = vunpack.i.l.bf16 %v2889_v35  ;;  %v718_v6 = vsel %vm712_vm2, %v701_v55, %v2876_v50 }
  0xa0   :  { %v2886_v63 = vunpack.i.h.bf16 %v2884_v36  ;;  %v2885_v0 = vunpack.i.l.bf16 %v2884_v36  ;;  %v700_v1 = vsel %vm695_vm1, %v3609_v31, %v2860_v22 }
  0xa1   :  { %v717_v5 = vsel %vm712_vm2, %v700_v1, %v2875_v51  ;;  %v736_v10 = vsel %vm729_vm3, %v719_v2, %v2890_v54  ;;  %v737_v8 = vsel %vm729_vm3, %v720_v3, %v2891_v53 }
  0xa2   :  { %v4056_v38 = vpop.permute.xlu1 %2898  ;;  %2738 = vmatpush3.bf16.msra.mxu0 %v3426_v30  ;;  %v734_v12 = vsel %vm729_vm3, %v717_v5, %v2885_v0  ;;  %v735_v14 = vsel %vm729_vm3, %v718_v6, %v2886_v63 }
  0xa3   :  { %v2894_v39 = vpop.permute.xlu0 %2893  ;;  %2739 = vmatprep.subr.bf16.mxu0 %v3427_v37  ;;  %v2901_v17 = vunpack.i.h.bf16 %v4056_v38  ;;  %v2900_v18 = vunpack.i.l.bf16 %v4056_v38 }
  0xa4   :  { %v2896_v13 = vunpack.i.h.bf16 %v2894_v39  ;;  %v2895_v7 = vunpack.i.l.bf16 %v2894_v39 }
  0xa5   :  { %v753_v46 = vsel %vm746_vm4, %v736_v10, %v2900_v18  ;;  %v754_v47 = vsel %vm746_vm4, %v737_v8, %v2901_v17 }
  0xa6   :  { %v4058_v40 = vpop.permute.xlu1 %2908  ;;  %2740 = vmatpush3.bf16.msra.mxu0 %v3427_v37  ;;  %v751_v23 = vsel %vm746_vm4, %v734_v12, %v2895_v7  ;;  %v752_v24 = vsel %vm746_vm4, %v735_v14, %v2896_v13 }
  0xa7   :  { %v2904_v41 = vpop.permute.xlu0 %2903  ;;  %v2911_v25 = vunpack.i.h.bf16 %v4058_v40  ;;  %v2910_v26 = vunpack.i.l.bf16 %v4058_v40 }
  0xa8   :  { %v2906_v9 = vunpack.i.h.bf16 %v2904_v41  ;;  %v2905_v31 = vunpack.i.l.bf16 %v2904_v41 }
  0xa9   :  { %v770_v50 = vsel %vm763_vm5, %v753_v46, %v2910_v26  ;;  %v771_v51 = vsel %vm763_vm5, %v754_v47, %v2911_v25 }
  0xaa   :  { %v2919_v52 = vpop.permute.xlu1 %2918  ;;  %v768_v32 = vsel %vm763_vm5, %v751_v23, %v2905_v31  ;;  %v769_v28 = vsel %vm763_vm5, %v752_v24, %v2906_v9 }
  0xab   :  { %v2914_v56 = vpop.permute.xlu0 %2913  ;;  %v2921_v33 = vunpack.i.h.bf16 %v2919_v52  ;;  %v2920_v29 = vunpack.i.l.bf16 %v2919_v52 }
  0xac   :  { %v2916_v15 = vunpack.i.h.bf16 %v2914_v56  ;;  %v2915_v16 = vunpack.i.l.bf16 %v2914_v56 }
  0xad   :  { %v787_v54 = vsel %vm780_vm6, %v770_v50, %v2920_v29  ;;  %v788_v56 = vsel %vm780_vm6, %v771_v51, %v2921_v33 }
  0xae   :  { %v2929_v4 = vpop.permute.xlu1 %2928  ;;  %v785_v35 = vsel %vm780_vm6, %v768_v32, %v2915_v16  ;;  %v786_v36 = vsel %vm780_vm6, %v769_v28, %v2916_v15  ;;  %v42_v15 = vld [vmem:[%s4863_s0 + $0x90] sm:$0xff] }
  0xaf   :  { %v2924_v11 = vpop.permute.xlu0 %2923  ;;  %v2931_v39 = vunpack.i.h.bf16 %v2929_v4  ;;  %v2930_v41 = vunpack.i.l.bf16 %v2929_v4 }
  0xb0   :  { %v2926_v19 = vunpack.i.h.bf16 %v2924_v11  ;;  %v2925_v21 = vunpack.i.l.bf16 %v2924_v11 }
  0xb1   :  { %v804_v63 = vsel %vm797_vm7, %v787_v54, %v2930_v41  ;;  %v805_v0 = vsel %vm797_vm7, %v788_v56, %v2931_v39 }
  0xb2   :  { %v4084_v27 = vpop.permute.xlu1 %2938  ;;  %v802_v43 = vsel %vm797_vm7, %v785_v35, %v2925_v21  ;;  %v803_v40 = vsel %vm797_vm7, %v786_v36, %v2926_v19 }
  0xb3   :  { %v2934_v30 = vpop.permute.xlu0 %2933  ;;  %v2941_v11 = vunpack.i.h.bf16 %v4084_v27  ;;  %v2940_v12 = vunpack.i.l.bf16 %v4084_v27 }
  0xb4   :  { %v2936_v37 = vunpack.i.h.bf16 %v2934_v30  ;;  %v2935_v38 = vunpack.i.l.bf16 %v2934_v30 }
  0xb5   :  { %v704_v27 = vsel %vm695_vm1, %v42_v15, %v2940_v12  ;;  %v705_v32 = vsel %vm695_vm1, %v3863_v60, %v2941_v11 }
  0xb6   :  { %v819_v22 = vsel %vm814_vm8, %v802_v43, %v2935_v38  ;;  %v820_v48 = vsel %vm814_vm8, %v803_v40, %v2936_v37  ;;  %v2949_v49 = vpop.permute.xlu1 %2948 }
  0xb7   :  { %v833_v52 = vpack.c.bf16 %v820_v48, %v819_v22  ;;  %v2944_v53 = vpop.permute.xlu0 %2943  ;;  %v2951_v9 = vunpack.i.h.bf16 %v2949_v49  ;;  %v2950_v31 = vunpack.i.l.bf16 %v2949_v49 }
  0xb8   :  { %v2946_v57 = vunpack.i.h.bf16 %v2944_v53  ;;  %v2945_v62 = vunpack.i.l.bf16 %v2944_v53 }
  0xb9   :  { %2697 = vmatprep.mubr.msk.bf16.mxu0 %vm859_vm9, %v833_v52  ;;  %v706_v23 = vsel %vm695_vm1, %v3868_v61, %v2950_v31  ;;  %v707_v24 = vsel %vm695_vm1, %v3853_v58, %v2951_v9 }
  0xba   :  { %v821_v1 = vsel %vm814_vm8, %v804_v63, %v2945_v62  ;;  %v822_v55 = vsel %vm814_vm8, %v805_v0, %v2946_v57  ;;  %v2959_v2 = vpop.permute.xlu1 %2958 }
  0xbb   :  { %v834_v3 = vpack.c.bf16 %v822_v55, %v821_v1  ;;  %v2954_v5 = vpop.permute.xlu0 %2953  ;;  %v2960_v14 = vunpack.i.l.bf16 %v2959_v2 }
  0xbc   :  { %v2956_v16 = vunpack.i.h.bf16 %v2954_v5  ;;  %v2955_v17 = vunpack.i.l.bf16 %v2954_v5 }
  0xbd   :  { %2698 = vmatmul.mubr.msk.bf16.gmra.mxu0 %vm859_vm9, %v834_v3  ;;  %v723_v28 = vsel %vm712_vm2, %v706_v23, %v2960_v14 }
  0xbe   :  { %2741 = vmatprep.mubr.msk.bf16.mxu0 %vm859_vm9, %v4035_v20  ;;  %v2969_v6 = vpop.permute.xlu1 %2968  ;;  %v2961_v20 = vunpack.i.h.bf16 %v2959_v2  ;;  %v721_v29 = vsel %vm712_vm2, %v704_v27, %v2955_v17  ;;  %v722_v61 = vsel %vm712_vm2, %v705_v32, %v2956_v16 }
  0xbf   :  { %v2964_v13 = vpop.permute.xlu0 %2963  ;;  %v2971_v18 = vunpack.i.h.bf16 %v2969_v6  ;;  %v2970_v19 = vunpack.i.l.bf16 %v2969_v6 }
  0xc0   :  { %v2966_v25 = vunpack.i.h.bf16 %v2964_v13  ;;  %v2965_v26 = vunpack.i.l.bf16 %v2964_v13  ;;  %v724_v33 = vsel %vm712_vm2, %v707_v24, %v2961_v20 }
  0xc1   :  { %v740_v36 = vsel %vm729_vm3, %v723_v28, %v2970_v19  ;;  %v741_v37 = vsel %vm729_vm3, %v724_v33, %v2971_v18 }
  0xc2   :  { %v4108_v7 = vpop.permute.xlu1 %2978  ;;  %v738_v41 = vsel %vm729_vm3, %v721_v29, %v2965_v26  ;;  %v739_v43 = vsel %vm729_vm3, %v722_v61, %v2966_v25 }
  0xc3   :  { %v2974_v4 = vpop.permute.xlu0 %2973  ;;  %v2981_v47 = vunpack.i.h.bf16 %v4108_v7  ;;  %v2980_v22 = vunpack.i.l.bf16 %v4108_v7 }
  0xc4   :  { %v2976_v30 = vunpack.i.h.bf16 %v2974_v4  ;;  %v2975_v35 = vunpack.i.l.bf16 %v2974_v4 }
  0xc5   :  { %2742 = vmatmul.mubr.msk.bf16.vlgmr.msra.gmra.mxu0 %vm859_vm9, %v4045_v34  ;;  %v757_v4 = vsel %vm746_vm4, %v740_v36, %v2980_v22 }
  0xc6   :  { %2745 = vmatprep.mubr.msk.bf16.mxu0 %vm859_vm9, %v833_v52  ;;  %v4113_v10 = vpop.permute.xlu1 %2988  ;;  %v755_v50 = vsel %vm746_vm4, %v738_v41, %v2975_v35  ;;  %v756_v51 = vsel %vm746_vm4, %v739_v43, %v2976_v30 }
  0xc7   :  { %v2984_v8 = vpop.permute.xlu0 %2983  ;;  %v2991_v52 = vunpack.i.h.bf16 %v4113_v10  ;;  %v2990_v53 = vunpack.i.l.bf16 %v4113_v10  ;;  %v758_v10 = vsel %vm746_vm4, %v741_v37, %v2981_v47 }
  0xc8   :  { %v2986_v38 = vunpack.i.h.bf16 %v2984_v8  ;;  %v2985_v39 = vunpack.i.l.bf16 %v2984_v8 }
  0xc9   :  { %v774_v11 = vsel %vm763_vm5, %v757_v4, %v2990_v53  ;;  %v775_v12 = vsel %vm763_vm5, %v758_v10, %v2991_v52 }
  0xca   :  { %v2999_v34 = vpop.permute.xlu1 %2998  ;;  %v772_v56 = vsel %vm763_vm5, %v755_v50, %v2985_v39  ;;  %v773_v57 = vsel %vm763_vm5, %v756_v51, %v2986_v38 }
  0xcb   :  { %v2994_v21 = vpop.permute.xlu0 %2993  ;;  %v3001_v62 = vunpack.i.h.bf16 %v2999_v34  ;;  %v3000_v63 = vunpack.i.l.bf16 %v2999_v34 }
  0xcc   :  { %v2996_v40 = vunpack.i.h.bf16 %v2994_v21  ;;  %v2995_v46 = vunpack.i.l.bf16 %v2994_v21 }
  0xcd   :  { %2746 = vmatmul.mubr.msk.bf16.gmra.mxu0 %vm859_vm9, %v834_v3  ;;  %v791_v15 = vsel %vm780_vm6, %v774_v11, %v3000_v63  ;;  %v792_v16 = vsel %vm780_vm6, %v775_v12, %v3001_v62 }
  0xce   :  { %v3009_v58 = vpop.permute.xlu1 %3008  ;;  %v789_v1 = vsel %vm780_vm6, %v772_v56, %v2995_v46  ;;  %v790_v55 = vsel %vm780_vm6, %v773_v57, %v2996_v40 }
  0xcf   :  { %v3004_v60 = vpop.permute.xlu0 %3003  ;;  %v3011_v5 = vunpack.i.h.bf16 %v3009_v58  ;;  %v3010_v6 = vunpack.i.l.bf16 %v3009_v58 }
  0xd0   :  { %v3006_v48 = vunpack.i.h.bf16 %v3004_v60  ;;  %v3005_v49 = vunpack.i.l.bf16 %v3004_v60 }
  0xd1   :  { %v808_v18 = vsel %vm797_vm7, %v791_v15, %v3010_v6  ;;  %v809_v19 = vsel %vm797_vm7, %v792_v16, %v3011_v5 }
  0xd2   :  { %v3019_v54 = vpop.permute.xlu1 %3018  ;;  %v806_v13 = vsel %vm797_vm7, %v789_v1, %v3005_v49  ;;  %v807_v7 = vsel %vm797_vm7, %v790_v55, %v3006_v48 }
  0xd3   :  { %v3014_v0 = vpop.permute.xlu0 %3013  ;;  %v3021_v30 = vunpack.i.h.bf16 %v3019_v54  ;;  %v3020_v35 = vunpack.i.l.bf16 %v3019_v54 }
  0xd4   :  { %v3016_v2 = vunpack.i.h.bf16 %v3014_v0  ;;  %v3015_v3 = vunpack.i.l.bf16 %v3014_v0 }
  0xd5   :  { %v708_v48 = vsel %vm695_vm1, %v3858_v59, %v3020_v35  ;;  %v709_v49 = vsel %vm695_vm1, %v3964_v44, %v3021_v30 }
  0xd6   :  { %v3029_v8 = vpop.permute.xlu1 %3028  ;;  %v823_v9 = vsel %vm814_vm8, %v806_v13, %v3015_v3  ;;  %v824_v31 = vsel %vm814_vm8, %v807_v7, %v3016_v2 }
  0xd7   :  { %v3024_v20 = vpop.permute.xlu0 %3023  ;;  %v835_v14 = vpack.c.bf16 %v824_v31, %v823_v9  ;;  %v3031_v29 = vunpack.i.h.bf16 %v3029_v8  ;;  %v3030_v61 = vunpack.i.l.bf16 %v3029_v8 }
  0xd8   :  { %v3026_v17 = vunpack.i.h.bf16 %v3024_v20  ;;  %v3025_v34 = vunpack.i.l.bf16 %v3024_v20 }
  0xd9   :  { %2701 = vmatprep.mubr.msk.bf16.mxu1 %vm859_vm9, %v835_v14  ;;  %2749 = vmatprep.mubr.msk.bf16.mxu0 %vm859_vm9, %v835_v14  ;;  %v710_v40 = vsel %vm695_vm1, %v3969_v45, %v3030_v61  ;;  %v711_v46 = vsel %vm695_vm1, %v3956_v42, %v3031_v29  ;;  %vm2041_vm1 = vcmask 588800  }
  0xda   :  { %v825_v21 = vsel %vm814_vm8, %v808_v18, %v3025_v34  ;;  %v826_v23 = vsel %vm814_vm8, %v809_v19, %v3026_v17  ;;  %v3039_v24 = vpop.permute.xlu1 %3038 }
  0xdb   :  { %v836_v25 = vpack.c.bf16 %v826_v23, %v825_v21  ;;  %v3034_v26 = vpop.permute.xlu0 %3033  ;;  %v3041_v58 = vunpack.i.h.bf16 %v3039_v24  ;;  %v3040_v36 = vunpack.i.l.bf16 %v3039_v24 }
  0xdc   :  { %v3036_v38 = vunpack.i.h.bf16 %v3034_v26  ;;  %v3035_v39 = vunpack.i.l.bf16 %v3034_v26 }
  0xdd   :  { %2702 = vmatmul.mubr.msk.bf16.vlgmr.msra.gmra.mxu1 %vm859_vm9, %v836_v25  ;;  %2750 = vmatmul.mubr.msk.bf16.gmra.mxu0 %vm859_vm9, %v836_v25  ;;  %v727_v50 = vsel %vm712_vm2, %v710_v40, %v3040_v36  ;;  %v728_v51 = vsel %vm712_vm2, %v711_v46, %v3041_v58 }
  0xde   :  { %v3049_v27 = vpop.permute.xlu1 %3048  ;;  %v725_v53 = vsel %vm712_vm2, %v708_v48, %v3035_v39  ;;  %v726_v45 = vsel %vm712_vm2, %v709_v49, %v3036_v38 }
  0xdf   :  { %v3044_v32 = vpop.permute.xlu0 %3043  ;;  %v3051_v41 = vunpack.i.h.bf16 %v3049_v27  ;;  %v3050_v43 = vunpack.i.l.bf16 %v3049_v27 }
  0xe0   :  { %v3046_v47 = vunpack.i.h.bf16 %v3044_v32  ;;  %v3045_v22 = vunpack.i.l.bf16 %v3044_v32 }
  0xe1   :  { %v744_v57 = vsel %vm729_vm3, %v727_v50, %v3050_v43  ;;  %v745_v62 = vsel %vm729_vm3, %v728_v51, %v3051_v41  ;;  %v3467_v41 = vmov 0.0  }
  0xe2   :  { %v3059_v28 = vpop.permute.xlu1 %3058  ;;  %v742_v44 = vsel %vm729_vm3, %v725_v53, %v3045_v22  ;;  %v743_v0 = vsel %vm729_vm3, %v726_v45, %v3046_v47  ;;  %1148 = vst.msk [vmem:[#allocation2] sm:$0xff] %vm712_vm2, %v3467_v41  ;;  %1151 = vst.msk [vmem:[#allocation2 + $0xa0] sm:$0xff] %vm712_vm2, %v3467_v41 }
  0xe3   :  { %v3054_v33 = vpop.permute.xlu0 %3053  ;;  %v3061_v54 = vunpack.i.h.bf16 %v3059_v28  ;;  %v3060_v56 = vunpack.i.l.bf16 %v3059_v28  ;;  %1150 = vst.msk [vmem:[#allocation2 + $0x8] sm:$0x3] %vm1149_vm10, %v3467_v41  ;;  %1152 = vst.msk [vmem:[#allocation2 + $0xa8] sm:$0x3] %vm1149_vm10, %v3467_v41 }
  0xe4   :  { %v3056_v59 = vunpack.i.h.bf16 %v3054_v33  ;;  %v3055_v63 = vunpack.i.l.bf16 %v3054_v33  ;;  %1154 = vst.msk [vmem:[#allocation2 + $0x90] sm:$0xff] %vm712_vm2, %v3467_v41  ;;  %1156 = vst.msk [vmem:[#allocation2 + $0x130] sm:$0xff] %vm712_vm2, %v3467_v41 }
  0xe5   :  { %v761_v7 = vsel %vm746_vm4, %v744_v57, %v3060_v56  ;;  %v762_v4 = vsel %vm746_vm4, %v745_v62, %v3061_v54  ;;  %1155 = vst.msk [vmem:[#allocation2 + $0x98] sm:$0x3] %vm1149_vm10, %v3467_v41  ;;  %1157 = vst.msk [vmem:[#allocation2 + $0x138] sm:$0x3] %vm1149_vm10, %v3467_v41 }
  0xe6   :  { %v3069_v37 = vpop.permute.xlu1 %3068  ;;  %v759_v31 = vsel %vm746_vm4, %v742_v44, %v3055_v63  ;;  %v760_v11 = vsel %vm746_vm4, %v743_v0, %v3056_v59  ;;  %1177 = vst.msk [vmem:[#allocation2 + $0x29] sm:$0x1] %vm1159_vm11, %v3467_v41  ;;  %1178 = vst.msk [vmem:[#allocation2 + $0x39] sm:$0x1] %vm1159_vm11, %v3467_v41 }
  0xe7   :  { %v3064_v60 = vpop.permute.xlu0 %3063  ;;  %v3071_v1 = vunpack.i.h.bf16 %v3069_v37  ;;  %v3070_v55 = vunpack.i.l.bf16 %v3069_v37  ;;  %1160 = vst.msk [vmem:[#allocation2 + $0x10] sm:$0x1] %vm1159_vm11, %v3467_v41  ;;  %1161 = vst.msk [vmem:[#allocation2 + $0x20] sm:$0x1] %vm1159_vm11, %v3467_v41 }
  0xe8   :  { %v3066_v2 = vunpack.i.h.bf16 %v3064_v60  ;;  %v3065_v3 = vunpack.i.l.bf16 %v3064_v60  ;;  %1162 = vst.msk [vmem:[#allocation2 + $0x30] sm:$0x1] %vm1159_vm11, %v3467_v41  ;;  %1163 = vst.msk [vmem:[#allocation2 + $0x40] sm:$0x1] %vm1159_vm11, %v3467_v41 }
  0xe9   :  { %v778_v14 = vsel %vm763_vm5, %v761_v7, %v3070_v55  ;;  %v779_v15 = vsel %vm763_vm5, %v762_v4, %v3071_v1  ;;  %1164 = vst.msk [vmem:[#allocation2 + $0x50] sm:$0x1] %vm1159_vm11, %v3467_v41  ;;  %1165 = vst.msk [vmem:[#allocation2 + $0x60] sm:$0x1] %vm1159_vm11, %v3467_v41 }
  0xea   :  { %v3079_v52 = vpop.permute.xlu1 %3078  ;;  %v776_v34 = vsel %vm763_vm5, %v759_v31, %v3065_v3  ;;  %v777_v18 = vsel %vm763_vm5, %v760_v11, %v3066_v2  ;;  %1166 = vst.msk [vmem:[#allocation2 + $0x70] sm:$0x1] %vm1159_vm11, %v3467_v41  ;;  %1167 = vst.msk [vmem:[#allocation2 + $0x80] sm:$0x1] %vm1159_vm11, %v3467_v41 }
  0xeb   :  { %v3074_v42 = vpop.permute.xlu0 %3073  ;;  %v3081_v5 = vunpack.i.h.bf16 %v3079_v52  ;;  %v3080_v6 = vunpack.i.l.bf16 %v3079_v52  ;;  %1168 = vst.msk [vmem:[#allocation2 + $0xb0] sm:$0x1] %vm1159_vm11, %v3467_v41  ;;  %1169 = vst.msk [vmem:[#allocation2 + $0xc0] sm:$0x1] %vm1159_vm11, %v3467_v41 }
  0xec   :  { %v3076_v10 = vunpack.i.h.bf16 %v3074_v42  ;;  %v3075_v8 = vunpack.i.l.bf16 %v3074_v42  ;;  %1170 = vst.msk [vmem:[#allocation2 + $0xd0] sm:$0x1] %vm1159_vm11, %v3467_v41  ;;  %1171 = vst.msk [vmem:[#allocation2 + $0xe0] sm:$0x1] %vm1159_vm11, %v3467_v41 }
  0xed   :  { %v795_v19 = vsel %vm780_vm6, %v778_v14, %v3080_v6  ;;  %v796_v21 = vsel %vm780_vm6, %v779_v15, %v3081_v5  ;;  %1172 = vst.msk [vmem:[#allocation2 + $0xf0] sm:$0x1] %vm1159_vm11, %v3467_v41  ;;  %1173 = vst.msk [vmem:[#allocation2 + $0x100] sm:$0x1] %vm1159_vm11, %v3467_v41 }
  0xee   :  { %v3089_v13 = vpop.permute.xlu1 %3088  ;;  %v793_v24 = vsel %vm780_vm6, %v776_v34, %v3075_v8  ;;  %v794_v25 = vsel %vm780_vm6, %v777_v18, %v3076_v10  ;;  %1174 = vst.msk [vmem:[#allocation2 + $0x110] sm:$0x1] %vm1159_vm11, %v3467_v41  ;;  %1175 = vst.msk [vmem:[#allocation2 + $0x120] sm:$0x1] %vm1159_vm11, %v3467_v41 }
  0xef   :  { %v3084_v9 = vpop.permute.xlu0 %3083  ;;  %v3091_v12 = vunpack.i.h.bf16 %v3089_v13  ;;  %v3090_v20 = vunpack.i.l.bf16 %v3089_v13  ;;  %1176 = vst.msk [vmem:[#allocation2 + $0x19] sm:$0x1] %vm1159_vm11, %v3467_v41  ;;  %1179 = vst.msk [vmem:[#allocation2 + $0x49] sm:$0x1] %vm1159_vm11, %v3467_v41 }
  0xf0   :  { %v3086_v16 = vunpack.i.h.bf16 %v3084_v9  ;;  %v3085_v17 = vunpack.i.l.bf16 %v3084_v9  ;;  %1180 = vst.msk [vmem:[#allocation2 + $0x59] sm:$0x1] %vm1159_vm11, %v3467_v41  ;;  %1181 = vst.msk [vmem:[#allocation2 + $0x69] sm:$0x1] %vm1159_vm11, %v3467_v41 }
  0xf1   :  { %v812_v28 = vsel %vm797_vm7, %v795_v19, %v3090_v20  ;;  %v813_v33 = vsel %vm797_vm7, %v796_v21, %v3091_v12  ;;  %1182 = vst.msk [vmem:[#allocation2 + $0x79] sm:$0x1] %vm1159_vm11, %v3467_v41  ;;  %1183 = vst.msk [vmem:[#allocation2 + $0x89] sm:$0x1] %vm1159_vm11, %v3467_v41 }
  0xf2   :  { %v3099_v23 = vpop.permute.xlu1 %3098  ;;  %v810_v30 = vsel %vm797_vm7, %v793_v24, %v3085_v17  ;;  %v811_v35 = vsel %vm797_vm7, %v794_v25, %v3086_v16  ;;  %1184 = vst.msk [vmem:[#allocation2 + $0xb9] sm:$0x1] %vm1159_vm11, %v3467_v41  ;;  %1185 = vst.msk [vmem:[#allocation2 + $0xc9] sm:$0x1] %vm1159_vm11, %v3467_v41 }
  0xf3   :  { %v3101_v26 = vunpack.i.h.bf16 %v3099_v23  ;;  %v3100_v27 = vunpack.i.l.bf16 %v3099_v23  ;;  %v3094_v32 = vpop.permute.xlu0 %3093  ;;  %1186 = vst.msk [vmem:[#allocation2 + $0xd9] sm:$0x1] %vm1159_vm11, %v3467_v41  ;;  %1187 = vst.msk [vmem:[#allocation2 + $0xe9] sm:$0x1] %vm1159_vm11, %v3467_v41 }
  0xf4   :  { %v3096_v29 = vunpack.i.h.bf16 %v3094_v32  ;;  %v3095_v61 = vunpack.i.l.bf16 %v3094_v32  ;;  %1188 = vst.msk [vmem:[#allocation2 + $0xf9] sm:$0x1] %vm1159_vm11, %v3467_v41  ;;  %1189 = vst.msk [vmem:[#allocation2 + $0x109] sm:$0x1] %vm1159_vm11, %v3467_v41 }
  0xf5   :  { %v829_v58 = vsel %vm814_vm8, %v812_v28, %v3100_v27  ;;  %v830_v36 = vsel %vm814_vm8, %v813_v33, %v3101_v26  ;;  %1190 = vst.msk [vmem:[#allocation2 + $0x119] sm:$0x1] %vm1159_vm11, %v3467_v41  ;;  %1191 = vst.msk [vmem:[#allocation2 + $0x129] sm:$0x1] %vm1159_vm11, %v3467_v41 }
  0xf6   :  { %v838_v37 = vpack.c.bf16 %v830_v36, %v829_v58  ;;  %v827_v38 = vsel %vm814_vm8, %v810_v30, %v3095_v61  ;;  %v828_v39 = vsel %vm814_vm8, %v811_v35, %v3096_v29 }
  0xf7   :  { %v837_v60 = vpack.c.bf16 %v828_v39, %v827_v38 }
  0xf9   :  { %2705 = vmatprep.mubr.msk.bf16.mxu1 %vm859_vm9, %v837_v60  ;;  %2753 = vmatprep.mubr.msk.bf16.mxu0 %vm859_vm9, %v837_v60 }
  0xfa   :  { %2706 = vmatmul.mubr.msk.bf16.gmra.mxu1 %vm859_vm9, %v838_v37  ;;  %2754 = vmatmul.mubr.msk.bf16.gmra.mxu0 %vm859_vm9, %v838_v37 }
 0x15d   :  { %v4240_v43 = vpop.f32.mrf.mxu0 }
 0x15e   :  { %v1028_v56 = vmul.f32 %v4240_v43, %v4240_v43  ;;  %v990_v62 = vsel %vm712_vm2, %v4240_v43, 0.0 }
 0x15f   :  { %v4242_v40 = vpop.f32.mrf.mxu0 }
 0x160   :  { %v1026_v50 = vmul.f32 %v4242_v40, %v4242_v40  ;;  %v987_v52 = vsel %vm712_vm2, %v4242_v40, 0.0  ;;  %v1045_v0 = vsel %vm712_vm2, %v1028_v56, 0.0 }
 0x161   :  { %v4244_v46 = vpop.f32.mrf.mxu0 }
 0x162   :  { %v1042_v42 = vsel %vm712_vm2, %v1026_v50, 0.0  ;;  %v1029_v1 = vmul.f32 %v4244_v46, %v4244_v46  ;;  %v992_v3 = vsel %vm712_vm2, %v4244_v46, 0.0 }
 0x163   :  { %v4246_v47 = vpop.f32.mrf.mxu0 }
 0x164   :  { %v1027_v48 = vmul.f32 %v4246_v47, %v4246_v47  ;;  %v988_v51 = vsel %vm712_vm2, %v4246_v47, 0.0  ;;  %v1047_v4 = vsel %vm712_vm2, %v1029_v1, 0.0 }
 0x165   :  { %v989_v45 = vadd.f32 %v988_v51, %v987_v52 }
 0x166   :  { %v1043_v53 = vsel %vm712_vm2, %v1027_v48, 0.0 }
 0x167   :  { %v1044_v57 = vadd.f32 %v1043_v53, %v1042_v42  ;;  %v991_v59 = vadd.f32 %v990_v62, %v989_v45 }
 0x169   :  { %v1046_v2 = vadd.f32 %v1045_v0, %v1044_v57  ;;  %v993_v13 = vadd.f32 %v992_v3, %v991_v59 }
 0x16b   :  { %v1048_v31 = vadd.f32 %v1047_v4, %v1046_v2 }
 0x17d   :  { %v4248_v22 = vpop.f32.mrf.mxu0 }
 0x17e   :  { %v1032_v15 = vmul.f32 %v4248_v22, %v4248_v22  ;;  %v998_v17 = vsel %vm712_vm2, %v4248_v22, 0.0 }
 0x17f   :  { %v4252_v49 = vpop.f32.mrf.mxu0 }
 0x180   :  { %v1030_v55 = vmul.f32 %v4252_v49, %v4252_v49  ;;  %v994_v5 = vsel %vm712_vm2, %v4252_v49, 0.0  ;;  %v1053_v19 = vsel %vm712_vm2, %v1032_v15, 0.0 }
 0x181   :  { %v4261_v54 = vpop.f32.mrf.mxu0  ;;  %v995_v9 = vadd.f32 %v994_v5, %v993_v13 }
 0x182   :  { %v1049_v10 = vsel %vm712_vm2, %v1030_v55, 0.0  ;;  %v1033_v21 = vmul.f32 %v4261_v54, %v4261_v54  ;;  %v1000_v25 = vsel %vm712_vm2, %v4261_v54, 0.0 }
 0x183   :  { %v4268_v63 = vpop.f32.mrf.mxu0  ;;  %v1050_v12 = vadd.f32 %v1049_v10, %v1048_v31 }
 0x184   :  { %v1031_v6 = vmul.f32 %v4268_v63, %v4268_v63  ;;  %v996_v8 = vsel %vm712_vm2, %v4268_v63, 0.0  ;;  %v1055_v28 = vsel %vm712_vm2, %v1033_v21, 0.0 }
 0x185   :  { %v997_v20 = vadd.f32 %v996_v8, %v995_v9 }
 0x186   :  { %v1051_v11 = vsel %vm712_vm2, %v1031_v6, 0.0 }
 0x187   :  { %v1052_v16 = vadd.f32 %v1051_v11, %v1050_v12  ;;  %v999_v34 = vadd.f32 %v998_v17, %v997_v20 }
 0x189   :  { %v1054_v24 = vadd.f32 %v1053_v19, %v1052_v16  ;;  %v1001_v32 = vadd.f32 %v1000_v25, %v999_v34 }
 0x18b   :  { %v1056_v30 = vadd.f32 %v1055_v28, %v1054_v24 }
 0x19d   :  { %v4270_v44 = vpop.f32.mrf.mxu1 }
 0x19e   :  { %v1036_v37 = vmul.f32 %v4270_v44, %v4270_v44  ;;  %v1006_v39 = vsel %vm712_vm2, %v4270_v44, 0.0 }
 0x19f   :  { %v4283_v7 = vpop.f32.mrf.mxu1 }
 0x1a0   :  { %v1034_v23 = vmul.f32 %v4283_v7, %v4283_v7  ;;  %v1002_v26 = vsel %vm712_vm2, %v4283_v7, 0.0  ;;  %v1061_v48 = vsel %vm712_vm2, %v1036_v37, 0.0 }
 0x1a1   :  { %v4290_v14 = vpop.f32.mrf.mxu1  ;;  %v1003_v61 = vadd.f32 %v1002_v26, %v1001_v32 }
 0x1a2   :  { %v1057_v33 = vsel %vm712_vm2, %v1034_v23, 0.0  ;;  %v1037_v50 = vmul.f32 %v4290_v14, %v4290_v14  ;;  %v1008_v53 = vsel %vm712_vm2, %v4290_v14, 0.0 }
 0x1a3   :  { %v4296_v18 = vpop.f32.mrf.mxu1  ;;  %v1058_v58 = vadd.f32 %v1057_v33, %v1056_v30 }
 0x1a4   :  { %v1035_v27 = vmul.f32 %v4296_v18, %v4296_v18  ;;  %v1004_v29 = vsel %vm712_vm2, %v4296_v18, 0.0  ;;  %v1063_v62 = vsel %vm712_vm2, %v1037_v50, 0.0 }
 0x1a5   :  { %v1005_v36 = vadd.f32 %v1004_v29, %v1003_v61 }
 0x1a6   :  { %v1059_v35 = vsel %vm712_vm2, %v1035_v27, 0.0 }
 0x1a7   :  { %v1060_v38 = vadd.f32 %v1059_v35, %v1058_v58  ;;  %v1007_v60 = vadd.f32 %v1006_v39, %v1005_v36 }
 0x1a9   :  { %v1062_v51 = vadd.f32 %v1061_v48, %v1060_v38  ;;  %v1009_v42 = vadd.f32 %v1008_v53, %v1007_v60  ;;  %v1087_v38 = vlaneseq  ;;  %v985_v60 = vld [vmem:[%s4865_s2] sm:$0x1] }
 0x1aa   :  { %v986_v53 = vld [vmem:[%s4866_s3] sm:$0x1] }
 0x1ab   :  { %v1064_v1 = vadd.f32 %v1063_v62, %v1062_v51  ;;  %v1088_v39 = vshrl.u32 %v1087_v38, 7 }
 0x1ad   :  { %v4350_v48 = vsub.s32 0, %v1088_v39  ;;  %v1240_v39 = vld [vmem:[#allocation2 + $0x2] sm:$0xff] }
 0x1ba   :  { %v4318_v41 = vpop.f32.mrf.mxu1 }
 0x1bb   :  { %v1040_v2 = vmul.f32 %v4318_v41, %v4318_v41  ;;  %v1014_v4 = vsel %vm712_vm2, %v4318_v41, 0.0 }
 0x1bc   :  { %v4323_v52 = vpop.f32.mrf.mxu1 }
 0x1bd   :  { %v1010_v45 = vsel %vm712_vm2, %v4323_v52, 0.0  ;;  %v1038_v56 = vmul.f32 %v4323_v52, %v4323_v52  ;;  %v1069_v11 = vsel %vm712_vm2, %v1040_v2, 0.0 }
 0x1be   :  { %v4331_v57 = vpop.f32.mrf.mxu1  ;;  %v1011_v0 = vadd.f32 %v1010_v45, %v1009_v42 }
 0x1bf   :  { %v1065_v59 = vsel %vm712_vm2, %v1038_v56, 0.0  ;;  %v1041_v10 = vmul.f32 %v4331_v57, %v4331_v57  ;;  %v1016_v12 = vsel %vm712_vm2, %v4331_v57, 0.0 }
 0x1c0   :  { %v973_v55 = vpop.f32.mrf.mxu1  ;;  %v1066_v6 = vadd.f32 %v1065_v59, %v1064_v1 }
 0x1c1   :  { %v1012_v3 = vsel %vm712_vm2, %v973_v55, 0.0  ;;  %v1039_v5 = vmul.f32 %v973_v55, %v973_v55  ;;  %v1071_v16 = vsel %vm712_vm2, %v1041_v10, 0.0 }
 0x1c2   :  { %v1013_v13 = vadd.f32 %v1012_v3, %v1011_v0 }
 0x1c3   :  { %v1067_v8 = vsel %vm712_vm2, %v1039_v5, 0.0 }
 0x1c4   :  { %v1015_v9 = vadd.f32 %v1014_v4, %v1013_v13  ;;  %v1068_v31 = vadd.f32 %v1067_v8, %v1066_v6 }
 0x1c6   :  { %v1017_v20 = vadd.f32 %v1016_v12, %v1015_v9  ;;  %v1070_v15 = vadd.f32 %v1069_v11, %v1068_v31 }
 0x1c8   :  { %v1018_v17 = vrot.slane %v1017_v20, 4  ;;  %v1072_v34 = vadd.f32 %v1071_v16, %v1070_v15 }
 0x1ca   :  { %v1019_v19 = vadd.f32 %v1018_v17, %v1017_v20  ;;  %v1073_v21 = vrot.slane %v1072_v34, 4 }
 0x1cc   :  { %v1020_v23 = vrot.slane %v1019_v19, 2  ;;  %v1074_v24 = vadd.f32 %v1073_v21, %v1072_v34 }
 0x1ce   :  { %v1021_v25 = vadd.f32 %v1020_v23, %v1019_v19  ;;  %v1075_v26 = vrot.slane %v1074_v24, 2 }
 0x1d0   :  { %v1022_v27 = vrot.slane %v1021_v25, 1  ;;  %v1076_v32 = vadd.f32 %v1075_v26, %v1074_v24 }
 0x1d2   :  { %v1023_v28 = vadd.f32 %v1022_v27, %v1021_v25  ;;  %v1077_v33 = vrot.slane %v1076_v32, 1 }
 0x1d4   :  { %v1025_v29 = vmul.f32 0.0078125, %v1023_v28  ;;  %v1078_v61 = vadd.f32 %v1077_v33, %v1076_v32 }
 0x1d6   :  { %v1079_v30 = vmul.f32 0.0078125, %v1078_v61  ;;  %v1080_v35 = vmul.f32 %v1025_v29, %v1025_v29 }
 0x1d8   :  { %v1081_v58 = vsub.f32 %v1079_v30, %v1080_v35  ;;  %v1224_v30 = vld [vmem:[#allocation2 + $0x1] sm:$0xff] }
 0x1da   :  { %v1082_v36 = vmax.f32 %v1081_v58, 0.0 }
 0x1dc   :  { %v1083_v37 = vadd.f32 1e-05, %v1082_v36 }
 0x1de   :  { %3433 = vrsqrt.f32 %v1083_v37 }
 0x1eb   :  { %v3434_v50 = vpop.eup %3433 }
 0x1ec   :  { %v1085_v51 = vmul.f32 %v3434_v50, %v985_v60 }
 0x1ee   :  { %v1090_v45 = vrot.slane %v1085_v51, %v4350_v48  ;;  %v1108_v56 = vmul.f32 %v1085_v51, %v1025_v29 }
 0x1f0   :  { %v1105_v42 = vmul.f32 %v1090_v45, %v973_v55  ;;  %v1109_v62 = vsub.f32 %v986_v53, %v1108_v56  ;;  %v1093_v59 = vmul.f32 %v1090_v45, %v4246_v47  ;;  %v1094_v0 = vmul.f32 %v4240_v43, %v1090_v45 }
 0x1f1   :  { %v1092_v1 = vmul.f32 %v1090_v45, %v4242_v40  ;;  %v1095_v2 = vmul.f32 %v4244_v46, %v1090_v45  ;;  %v1096_v3 = vmul.f32 %v1090_v45, %v4252_v49  ;;  %v1097_v5 = vmul.f32 %v1090_v45, %v4268_v63 }
 0x1f2   :  { %v1114_v6 = vrot.slane %v1109_v62, %v4350_v48  ;;  %v1098_v13 = vmul.f32 %v4248_v22, %v1090_v45  ;;  %v1099_v4 = vmul.f32 %v4261_v54, %v1090_v45  ;;  %v1100_v55 = vmul.f32 %v1090_v45, %v4283_v7 }
 0x1f3   :  { %v1101_v47 = vmul.f32 %v1090_v45, %v4296_v18  ;;  %v1102_v43 = vmul.f32 %v4270_v44, %v1090_v45  ;;  %v1103_v40 = vmul.f32 %v4290_v14, %v1090_v45  ;;  %v1104_v46 = vmul.f32 %v1090_v45, %v4323_v52 }
 0x1f4   :  { %v1129_v10 = vadd.f32 %v1114_v6, %v1105_v42  ;;  %v1117_v49 = vadd.f32 %v1114_v6, %v1093_v59  ;;  %v1118_v8 = vadd.f32 %v1114_v6, %v1094_v0  ;;  %v1116_v63 = vadd.f32 %v1114_v6, %v1092_v1 }
 0x1f5   :  { %v1119_v9 = vadd.f32 %v1114_v6, %v1095_v2  ;;  %v1120_v31 = vadd.f32 %v1114_v6, %v1096_v3  ;;  %v1121_v11 = vadd.f32 %v1114_v6, %v1097_v5  ;;  %v1122_v22 = vadd.f32 %v1114_v6, %v1098_v13  ;;  %v3428_v13 = vld [vmem:[%s4867_s4 + $0x20] ss:$0 sps:$4 sm:$0xff]  }
 0x1f6   :  { %v1145_v12 = vmax.f32 %v1129_v10, 0.0  ;;  %v1133_v54 = vmax.f32 %v1117_v49, 0.0  ;;  %v1134_v20 = vmax.f32 %v1118_v8, 0.0  ;;  %v1132_v7 = vmax.f32 %v1116_v63, 0.0  ;;  %2765 = vmatprep.subr.msk.bf16.mxu1 %vm2066_vm12, %v3428_v13  ;;  %v3430_v49 = vld [vmem:[%s4867_s4 + $0x10] sm:$0xff]  }
 0x1f7   :  { %v1135_v15 = vmax.f32 %v1119_v9, 0.0  ;;  %v1136_v18 = vmax.f32 %v1120_v31, 0.0  ;;  %v1137_v16 = vmax.f32 %v1121_v11, 0.0  ;;  %v1138_v44 = vmax.f32 %v1122_v22, 0.0  ;;  %v3431_v9 = vld [vmem:[%s4867_s4 + $0x8] sm:$0xff]   ;;  %v3432_v31 = vld [vmem:[%s4867_s4] sm:$0xff]  }
 0x1f8   :  { %1205 = vst.msk [vmem:[#allocation2 + $0x101] sm:$0xff] %vm712_vm2, %v1145_v12  ;;  %1193 = vst.msk [vmem:[#allocation2 + $0x21] sm:$0xff] %vm712_vm2, %v1133_v54  ;;  %v1123_v14 = vadd.f32 %v1114_v6, %v1099_v4  ;;  %v1124_v52 = vadd.f32 %v1114_v6, %v1100_v55  ;;  %v1125_v17 = vadd.f32 %v1114_v6, %v1101_v47  ;;  %v3429_v47 = vld [vmem:[%s4867_s4 + $0x18] sm:$0xff]  }
 0x1f9   :  { %1194 = vst.msk [vmem:[#allocation2 + $0x31] sm:$0xff] %vm712_vm2, %v1134_v20  ;;  %1192 = vst.msk [vmem:[#allocation2 + $0x11] sm:$0xff] %vm712_vm2, %v1132_v7  ;;  %v1126_v34 = vadd.f32 %v1114_v6, %v1102_v43  ;;  %v1127_v19 = vadd.f32 %v1114_v6, %v1103_v40  ;;  %v1128_v21 = vadd.f32 %v1114_v6, %v1104_v46  ;;  %v2068_v40 = vsel %vm2066_vm12, %v3428_v13, 0 }
 0x1fa   :  { %1195 = vst.msk [vmem:[#allocation2 + $0x41] sm:$0xff] %vm712_vm2, %v1135_v15  ;;  %1196 = vst.msk [vmem:[#allocation2 + $0x51] sm:$0xff] %vm712_vm2, %v1136_v18  ;;  %v1106_v23 = vmul.f32 %v4318_v41, %v1090_v45  ;;  %v1107_v24 = vmul.f32 %v4331_v57, %v1090_v45  ;;  %v1139_v25 = vmax.f32 %v1123_v14, 0.0  ;;  %v1140_v26 = vmax.f32 %v1124_v52, 0.0  ;;  %2710 = vmatpush3.bf16.msra.mxu1 %v2068_v40 }
 0x1fb   :  { %1197 = vst.msk [vmem:[#allocation2 + $0x61] sm:$0xff] %vm712_vm2, %v1137_v16  ;;  %1198 = vst.msk [vmem:[#allocation2 + $0x71] sm:$0xff] %vm712_vm2, %v1138_v44  ;;  %v1141_v27 = vmax.f32 %v1125_v17, 0.0  ;;  %v1142_v32 = vmax.f32 %v1126_v34, 0.0  ;;  %v1143_v28 = vmax.f32 %v1127_v19, 0.0  ;;  %v1144_v33 = vmax.f32 %v1128_v21, 0.0  ;;  %2711 = vmatprep.subr.bf16.mxu1 %v3429_v47 }
 0x1fc   :  { %v1130_v29 = vadd.f32 %v1114_v6, %v1106_v23  ;;  %v1131_v61 = vadd.f32 %v1114_v6, %v1107_v24  ;;  %1199 = vst.msk [vmem:[#allocation2 + $0x81] sm:$0xff] %vm712_vm2, %v1139_v25  ;;  %1200 = vst.msk [vmem:[#allocation2 + $0xb1] sm:$0xff] %vm712_vm2, %v1140_v26  ;;  %v1312_v26 = vld [vmem:[#allocation2 + $0x90] sm:$0xff] }
 0x1fd   :  { %1201 = vst.msk [vmem:[#allocation2 + $0xc1] sm:$0xff] %vm712_vm2, %v1141_v27  ;;  %1202 = vst.msk [vmem:[#allocation2 + $0xd1] sm:$0xff] %vm712_vm2, %v1142_v32 }
 0x1fe   :  { %1203 = vst.msk [vmem:[#allocation2 + $0xe1] sm:$0xff] %vm712_vm2, %v1143_v28  ;;  %1204 = vst.msk [vmem:[#allocation2 + $0xf1] sm:$0xff] %vm712_vm2, %v1144_v33  ;;  %v1146_v41 = vmax.f32 %v1130_v29, 0.0  ;;  %v1147_v57 = vmax.f32 %v1131_v61, 0.0  ;;  %2712 = vmatpush3.bf16.msra.mxu1 %v3429_v47  ;;  %v1328_v28 = vld [vmem:[#allocation2 + $0x91] sm:$0xff]  ;;  %v1232_v29 = vld [vmem:[#allocation2 + $0xa1] sm:$0xff] }
 0x1ff   :  { %v1226_v35 = vld [vmem:[#allocation2 + $0x21] sm:$0xff]  ;;  %2713 = vmatprep.subr.bf16.mxu1 %v3430_v49 }
 0x200   :  { %v1227_v58 = vld [vmem:[#allocation2 + $0x31] sm:$0xff]  ;;  %1206 = vst.msk [vmem:[#allocation2 + $0x111] sm:$0xff] %vm712_vm2, %v1146_v41  ;;  %1207 = vst.msk [vmem:[#allocation2 + $0x121] sm:$0xff] %vm712_vm2, %v1147_v57  ;;  %v1242_v60 = vld [vmem:[#allocation2 + $0x22] sm:$0xff] }
 0x201   :  { %v1225_v36 = vld [vmem:[#allocation2 + $0x11] sm:$0xff]  ;;  %v3107_v37 = vpack.i.bf16 %v1227_v58, %v1226_v35  ;;  %v4392_v42 = vld [vmem:[#allocation2 + $0x40] sm:$0xff] }
 0x202   :  { %v3102_v38 = vpack.i.bf16 %v1225_v36, %v1224_v30  ;;  %v1243_v50 = vld [vmem:[#allocation2 + $0x32] sm:$0xff]  ;;  %v4396_v59 = vld [vmem:[#allocation2 + $0x20] sm:$0xff]  ;;  %v3132_v5 = vpack.i.bf16 %v1226_v35, %v1225_v36  ;;  %2714 = vmatpush3.bf16.msra.mxu1 %v3430_v49 }
 0x203   :  { %v1241_v51 = vld [vmem:[#allocation2 + $0x12] sm:$0xff]  ;;  %3108 = vrot.lane.b32.xlu1 %v3107_v37, %s3459_s25  ;;  %v3117_v53 = vpack.i.bf16 %v1243_v50, %v1242_v60  ;;  %v1275_v2 = vld [vmem:[#allocation2 + $0x41] sm:$0xff]  ;;  %2715 = vmatprep.subr.bf16.mxu1 %v3431_v9 }
 0x204   :  { %3103 = vrot.lane.b32.xlu0 %v3102_v38, %s3459_s25  ;;  %v3112_v45 = vpack.i.bf16 %v1241_v51, %v1240_v39  ;;  %v4390_v56 = vld [vmem:[#allocation2 + $0x30] sm:$0xff]  ;;  %v3137_v3 = vpack.i.bf16 %v1275_v2, %v1227_v58  ;;  %v1291_v6 = vld [vmem:[#allocation2 + $0x42] sm:$0xff]  ;;  %v3142_v55 = vpack.i.bf16 %v1242_v60, %v1241_v51 }
 0x205   :  { %v4394_v62 = vld [vmem:[#allocation2 + $0x10] sm:$0xff]  ;;  %v3127_v0 = vpack.i.bf16 %v4392_v42, %v4390_v56  ;;  %v3147_v4 = vpack.i.bf16 %v1291_v6, %v1243_v50  ;;  %v3152_v10 = vpack.i.bf16 %v4390_v56, %v4396_v59  ;;  %v1230_v11 = vld [vmem:[#allocation2 + $0x61] sm:$0xff] }
 0x206   :  { %v3122_v1 = vpack.i.bf16 %v4396_v59, %v4394_v62  ;;  %v4414_v43 = vld [vmem:[#allocation2 + $0x50] sm:$0xff]  ;;  %2716 = vmatpush3.bf16.msra.mxu1 %v3431_v9  ;;  %v1246_v7 = vld [vmem:[#allocation2 + $0x62] sm:$0xff] }
 0x207   :  { %3118 = vrot.lane.b32.xlu1 %v3117_v53, %s3462_s12  ;;  %v3157_v46 = vpack.i.bf16 %v4414_v43, %v4392_v42  ;;  %v1324_v8 = vld [vmem:[#allocation2 + $0x51] sm:$0xff]  ;;  %2717 = vmatprep.subr.bf16.mxu1 %v3432_v31  ;;  %v1263_v44 = vld [vmem:[#allocation2 + $0x80] sm:$0xff] }
 0x208   :  { %3113 = vrot.lane.b32.xlu0 %v3112_v45, %s3462_s12  ;;  %v3167_v63 = vpack.i.bf16 %v1324_v8, %v1275_v2  ;;  %v1231_v22 = vld [vmem:[#allocation2 + $0x71] sm:$0xff]  ;;  %v4441_v14 = vld [vmem:[#allocation2 + $0x60] sm:$0xff]  ;;  %v3212_v21 = vpack.i.bf16 %v1230_v11, %v1324_v8  ;;  %v3237_v27 = vpack.i.bf16 %v1312_v26, %v1263_v44 }
 0x209   :  { %v1340_v12 = vld [vmem:[#allocation2 + $0x52] sm:$0xff]  ;;  %v3187_v54 = vpack.i.bf16 %v1231_v22, %v1230_v11  ;;  %v3202_v17 = vpack.i.bf16 %v4441_v14, %v4414_v43  ;;  %v1279_v34 = vld [vmem:[#allocation2 + $0x81] sm:$0xff] }
 0x20a   :  { %v3182_v20 = vpack.i.bf16 %v1340_v12, %v1291_v6  ;;  %v1247_v15 = vld [vmem:[#allocation2 + $0x72] sm:$0xff]  ;;  %2718 = vmatpush3.bf16.msra.mxu1 %v3432_v31  ;;  %v3217_v19 = vpack.i.bf16 %v1279_v34, %v1231_v22  ;;  %v1295_v23 = vld [vmem:[#allocation2 + $0x82] sm:$0xff]  ;;  %v3222_v25 = vpack.i.bf16 %v1246_v7, %v1340_v12  ;;  %v3247_v33 = vpack.i.bf16 %v1328_v28, %v1279_v34 }
 0x20b   :  { %3128 = vrot.lane.b32.xlu1 %v3127_v0, %s3464_s27  ;;  %v3197_v18 = vpack.i.bf16 %v1247_v15, %v1246_v7  ;;  %v4439_v16 = vld [vmem:[#allocation2 + $0x70] sm:$0xff]  ;;  %v3227_v24 = vpack.i.bf16 %v1295_v23, %v1247_v15  ;;  %v1234_v41 = vld [vmem:[#allocation2 + $0xc1] sm:$0xff] }
 0x20c   :  { %3123 = vrot.lane.b32.xlu0 %v3122_v1, %s3464_s27  ;;  %v3207_v52 = vpack.i.bf16 %v1263_v44, %v4439_v16  ;;  %v3232_v32 = vpack.i.bf16 %v4439_v16, %v4441_v14  ;;  %v1233_v61 = vld [vmem:[#allocation2 + $0xb1] sm:$0xff]  ;;  %v1250_v38 = vld [vmem:[#allocation2 + $0xc2] sm:$0xff] }
 0x20d   :  { %v3257_v30 = vpack.i.bf16 %v1233_v61, %v1232_v29  ;;  %v1235_v57 = vld [vmem:[#allocation2 + $0xd1] sm:$0xff]  ;;  %v4466_v45 = vld [vmem:[#allocation2 + $0xe0] sm:$0xff]  ;;  %v3292_v13 = vpack.i.bf16 %v1234_v41, %v1233_v61 }
 0x20e   :  { %v1344_v35 = vld [vmem:[#allocation2 + $0x92] sm:$0xff]  ;;  %v3267_v58 = vpack.i.bf16 %v1235_v57, %v1234_v41  ;;  %v4470_v1 = vld [vmem:[#allocation2 + $0xc0] sm:$0xff] }
 0x20f   :  { %3138 = vrot.lane.b32.xlu1 %v3137_v3, %s3466_s17  ;;  %v3262_v36 = vpack.i.bf16 %v1344_v35, %v1295_v23  ;;  %v1251_v39 = vld [vmem:[#allocation2 + $0xd2] sm:$0xff]  ;;  %v1254_v12 = vld [vmem:[#allocation2 + $0x102] sm:$0xff] }
 0x210   :  { %3133 = vrot.lane.b32.xlu0 %v3132_v5, %s3466_s17  ;;  %v1249_v60 = vld [vmem:[#allocation2 + $0xb2] sm:$0xff]  ;;  %v3277_v50 = vpack.i.bf16 %v1251_v39, %v1250_v38  ;;  %v1283_v5 = vld [vmem:[#allocation2 + $0xe1] sm:$0xff] }
 0x211   :  { %v4468_v0 = vld [vmem:[#allocation2 + $0xb0] sm:$0xff]  ;;  %v3297_v6 = vpack.i.bf16 %v1283_v5, %v1235_v57  ;;  %v3302_v47 = vpack.i.bf16 %v1250_v38, %v1249_v60  ;;  %v1271_v15 = vld [vmem:[#allocation2 + $0x120] sm:$0xff] }
 0x212   :  { %v3282_v3 = vpack.i.bf16 %v4470_v1, %v4468_v0  ;;  %v4482_v40 = vld [vmem:[#allocation2 + $0xf0] sm:$0xff] }
 0x213   :  { %3148 = vrot.lane.b32.xlu1 %v3147_v4, %s3468_s20  ;;  %v1299_v4 = vld [vmem:[#allocation2 + $0xe2] sm:$0xff]  ;;  %v1332_v49 = vld [vmem:[#allocation2 + $0xf1] sm:$0xff] }
 0x214   :  { %3143 = vrot.lane.b32.xlu0 %v3142_v55, %s3468_s20  ;;  %v3307_v55 = vpack.i.bf16 %v1299_v4, %v1251_v39  ;;  %v3327_v8 = vpack.i.bf16 %v1332_v49, %v1283_v5  ;;  %v1239_v9 = vld [vmem:[#allocation2 + $0x111] sm:$0xff] }
 0x215   :  { %v1348_v31 = vld [vmem:[#allocation2 + $0xf2] sm:$0xff] }
 0x216   :  { %v3342_v22 = vpack.i.bf16 %v1348_v31, %v1299_v4  ;;  %v4498_v7 = vld [vmem:[#allocation2 + $0x110] sm:$0xff] }
 0x217   :  { %3158 = vrot.lane.b32.xlu1 %v3157_v46, %s3469_s28  ;;  %v3317_v46 = vpack.i.bf16 %v4482_v40, %v4466_v45  ;;  %v3367_v44 = vpack.i.bf16 %v1271_v15, %v4498_v7  ;;  %v1352_v41 = vld [vmem:[#allocation2 + $0x132] sm:$0xff] }
 0x218   :  { %3153 = vrot.lane.b32.xlu0 %v3152_v10, %s3469_s28 }
 0x21b   :  { %3168 = vrot.lane.b32.xlu1 %v3167_v63, %s3470_s21 }
 0x21c   :  { %3163 = vrot.lane.b32.xlu0 %v3107_v37, %s3470_s21  ;;  %v1248_v37 = vld [vmem:[#allocation2 + $0xa2] sm:$0xff] }
 0x21d   :  { %v3272_v51 = vpack.i.bf16 %v1249_v60, %v1248_v37 }
 0x21f   :  { %3178 = vrot.lane.b32.xlu1 %v3167_v63, %s3459_s25  ;;  %v1238_v63 = vld [vmem:[#allocation2 + $0x101] sm:$0xff] }
 0x220   :  { %3173 = vrot.lane.b32.xlu0 %v3117_v53, %s3471_s13  ;;  %v4464_v53 = vld [vmem:[#allocation2 + $0xd0] sm:$0xff]  ;;  %v3347_v11 = vpack.i.bf16 %v1239_v9, %v1238_v63 }
 0x221   :  { %v3287_v2 = vpack.i.bf16 %v4466_v45, %v4464_v53  ;;  %v3312_v10 = vpack.i.bf16 %v4464_v53, %v4470_v1 }
 0x223   :  { %3188 = vrot.lane.b32.xlu1 %v3187_v54, %s3459_s25 }
 0x224   :  { %3183 = vrot.lane.b32.xlu0 %v3182_v20, %s3471_s13 }
 0x227   :  { %3198 = vrot.lane.b32.xlu1 %v3197_v18, %s3462_s12 }
 0x228   :  { %3193 = vrot.lane.b32.xlu0 %v3182_v20, %s3462_s12 }
 0x22b   :  { %3208 = vrot.lane.b32.xlu1 %v3207_v52, %s3464_s27 }
 0x22c   :  { %3203 = vrot.lane.b32.xlu0 %v3202_v17, %s3464_s27  ;;  %v1287_v17 = vld [vmem:[#allocation2 + $0x121] sm:$0xff] }
 0x22d   :  { %v3377_v34 = vpack.i.bf16 %v1287_v17, %v1239_v9 }
 0x22f   :  { %3218 = vrot.lane.b32.xlu1 %v3217_v19, %s3466_s17  ;;  %v3372_v19 = vpack.i.bf16 %v1238_v63, %v1332_v49 }
 0x230   :  { %3213 = vrot.lane.b32.xlu0 %v3212_v21, %s3466_s17  ;;  %v1303_v21 = vld [vmem:[#allocation2 + $0x122] sm:$0xff] }
 0x233   :  { %3228 = vrot.lane.b32.xlu1 %v3227_v24, %s3468_s20  ;;  %v3382_v24 = vpack.i.bf16 %v1254_v12, %v1348_v31 }
 0x234   :  { %3223 = vrot.lane.b32.xlu0 %v3222_v25, %s3468_s20  ;;  %v1320_v25 = vld [vmem:[#allocation2 + $0x130] sm:$0xff] }
 0x237   :  { %3238 = vrot.lane.b32.xlu1 %v3237_v27, %s3469_s28 }
 0x238   :  { %3233 = vrot.lane.b32.xlu0 %v3232_v32, %s3469_s28  ;;  %v3397_v32 = vpack.i.bf16 %v1320_v25, %v1271_v15 }
 0x23b   :  { %3248 = vrot.lane.b32.xlu1 %v3247_v33, %s3470_s21  ;;  %v1336_v33 = vld [vmem:[#allocation2 + $0x131] sm:$0xff] }
 0x23c   :  { %3243 = vrot.lane.b32.xlu0 %v3187_v54, %s3470_s21  ;;  %v1255_v54 = vld [vmem:[#allocation2 + $0x112] sm:$0xff] }
 0x23d   :  { %v3357_v20 = vpack.i.bf16 %v1255_v54, %v1254_v12  ;;  %v3387_v23 = vpack.i.bf16 %v1303_v21, %v1255_v54 }
 0x23f   :  { %3258 = vrot.lane.b32.xlu1 %v3257_v30, %s3459_s25  ;;  %v3407_v30 = vpack.i.bf16 %v1336_v33, %v1287_v17 }
 0x240   :  { %3253 = vrot.lane.b32.xlu0 %v3197_v18, %s3471_s13  ;;  %v4500_v18 = vld [vmem:[#allocation2 + $0x100] sm:$0xff] }
 0x241   :  { %v3362_v52 = vpack.i.bf16 %v4500_v18, %v4482_v40  ;;  %v3392_v28 = vpack.i.bf16 %v4498_v7, %v4500_v18 }
 0x243   :  { %3268 = vrot.lane.b32.xlu1 %v3267_v58, %s3459_s25 }
 0x244   :  { %3263 = vrot.lane.b32.xlu0 %v3262_v36, %s3471_s13 }
 0x247   :  { %3278 = vrot.lane.b32.xlu1 %v3277_v50, %s3462_s12 }
 0x248   :  { %3273 = vrot.lane.b32.xlu0 %v3272_v51, %s3462_s12 }
 0x24b   :  { %3288 = vrot.lane.b32.xlu1 %v3287_v2, %s3464_s27 }
 0x24c   :  { %3283 = vrot.lane.b32.xlu0 %v3282_v3, %s3464_s27 }
 0x24f   :  { %3298 = vrot.lane.b32.xlu1 %v3297_v6, %s3466_s17  ;;  %v1208_v6 = vld [vmem:[#allocation2] sm:$0xff] }
 0x250   :  { %3293 = vrot.lane.b32.xlu0 %v3292_v13, %s3466_s17 }
 0x253   :  { %3308 = vrot.lane.b32.xlu1 %v3307_v55, %s3468_s20 }
 0x254   :  { %3303 = vrot.lane.b32.xlu0 %v3302_v47, %s3468_s20 }
 0x257   :  { %3318 = vrot.lane.b32.xlu1 %v3317_v46, %s3469_s28 }
 0x258   :  { %3313 = vrot.lane.b32.xlu0 %v3312_v10, %s3469_s28 }
 0x25b   :  { %3328 = vrot.lane.b32.xlu1 %v3327_v8, %s3470_s21 }
 0x25c   :  { %3323 = vrot.lane.b32.xlu0 %v3267_v58, %s3470_s21  ;;  %v3417_v58 = vpack.i.bf16 %v1352_v41, %v1303_v21 }
 0x25f   :  { %3338 = vrot.lane.b32.xlu1 %v3327_v8, %s3459_s25 }
 0x260   :  { %3333 = vrot.lane.b32.xlu0 %v3277_v50, %s3471_s13 }
 0x263   :  { %3348 = vrot.lane.b32.xlu1 %v3347_v11, %s3459_s25 }
 0x264   :  { %3343 = vrot.lane.b32.xlu0 %v3342_v22, %s3471_s13 }
 0x267   :  { %3358 = vrot.lane.b32.xlu1 %v3357_v20, %s3462_s12 }
 0x268   :  { %3353 = vrot.lane.b32.xlu0 %v3342_v22, %s3462_s12 }
 0x26b   :  { %3368 = vrot.lane.b32.xlu1 %v3367_v44, %s3464_s27 }
 0x26c   :  { %3363 = vrot.lane.b32.xlu0 %v3362_v52, %s3464_s27 }
 0x26f   :  { %3378 = vrot.lane.b32.xlu1 %v3377_v34, %s3466_s17 }
 0x270   :  { %3373 = vrot.lane.b32.xlu0 %v3372_v19, %s3466_s17 }
 0x273   :  { %3388 = vrot.lane.b32.xlu1 %v3387_v23, %s3468_s20 }
 0x274   :  { %3383 = vrot.lane.b32.xlu0 %v3382_v24, %s3468_s20 }
 0x275   :  { %v3109_v26 = vpop.permute.xlu1 %3108 }
 0x276   :  { %v3104_v27 = vpop.permute.xlu0 %3103  ;;  %v3111_v60 = vunpack.i.h.bf16 %v3109_v26  ;;  %v3110_v50 = vunpack.i.l.bf16 %v3109_v26 }
 0x277   :  { %3398 = vrot.lane.b32.xlu1 %v3397_v32, %s3469_s28  ;;  %v3106_v51 = vunpack.i.h.bf16 %v3104_v27  ;;  %v3105_v2 = vunpack.i.l.bf16 %v3104_v27 }
 0x278   :  { %3393 = vrot.lane.b32.xlu0 %v3392_v28, %s3469_s28  ;;  %v1868_v49 = vsel %vm712_vm2, %v4390_v56, %v3111_v60  ;;  %v1867_v8 = vsel %vm712_vm2, %v4396_v59, %v3110_v50 }
 0x279   :  { %v3119_v29 = vpop.permute.xlu1 %3118  ;;  %v1865_v31 = vsel %vm712_vm2, %v1208_v6, %v3105_v2 }
 0x27a   :  { %v3114_v61 = vpop.permute.xlu0 %3113  ;;  %v3121_v3 = vunpack.i.h.bf16 %v3119_v29  ;;  %v3120_v5 = vunpack.i.l.bf16 %v3119_v29 }
 0x27b   :  { %3408 = vrot.lane.b32.xlu1 %v3407_v30, %s3470_s21  ;;  %v3116_v13 = vunpack.i.h.bf16 %v3114_v61  ;;  %v3115_v4 = vunpack.i.l.bf16 %v3114_v61 }
 0x27c   :  { %3403 = vrot.lane.b32.xlu0 %v3347_v11, %s3470_s21  ;;  %v1866_v11 = vsel %vm712_vm2, %v4394_v62, %v3106_v51  ;;  %v1883_v22 = vsel %vm746_vm4, %v1867_v8, %v3120_v5  ;;  %v1884_v12 = vsel %vm746_vm4, %v1868_v49, %v3121_v3 }
 0x27d   :  { %v3129_v57 = vpop.permute.xlu1 %3128  ;;  %v1881_v54 = vsel %vm746_vm4, %v1865_v31, %v3115_v4 }
 0x27e   :  { %v3124_v35 = vpop.permute.xlu0 %3123  ;;  %v3131_v55 = vunpack.i.h.bf16 %v3129_v57  ;;  %v3130_v47 = vunpack.i.l.bf16 %v3129_v57 }
 0x27f   :  { %3418 = vrot.lane.b32.xlu1 %v3417_v58, %s3471_s13  ;;  %v3126_v63 = vunpack.i.h.bf16 %v3124_v35  ;;  %v3125_v9 = vunpack.i.l.bf16 %v3124_v35 }
 0x280   :  { %3413 = vrot.lane.b32.xlu0 %v3357_v20, %s3471_s13  ;;  %v1882_v20 = vsel %vm746_vm4, %v1866_v11, %v3116_v13  ;;  %v1899_v59 = vsel %vm780_vm6, %v1883_v22, %v3130_v47  ;;  %v1900_v44 = vsel %vm780_vm6, %v1884_v12, %v3131_v55 }
 0x281   :  { %v4521_v36 = vpop.permute.xlu1 %3138  ;;  %v1897_v62 = vsel %vm780_vm6, %v1881_v54, %v3125_v9  ;;  %v1898_v21 = vsel %vm780_vm6, %v1882_v20, %v3126_v63 }
 0x282   :  { %v3134_v37 = vpop.permute.xlu0 %3133  ;;  %v3141_v25 = vunpack.i.h.bf16 %v4521_v36  ;;  %v3140_v26 = vunpack.i.l.bf16 %v4521_v36 }
 0x283   :  { %v3136_v15 = vunpack.i.h.bf16 %v3134_v37  ;;  %v3135_v56 = vunpack.i.l.bf16 %v3134_v37 }
 0x284   :  { %v1915_v5 = vsel %vm814_vm8, %v1899_v59, %v3140_v26  ;;  %v1916_v6 = vsel %vm814_vm8, %v1900_v44, %v3141_v25 }
 0x285   :  { %v4523_v38 = vpop.permute.xlu1 %3148  ;;  %v1913_v28 = vsel %vm814_vm8, %v1897_v62, %v3135_v56  ;;  %v1914_v33 = vsel %vm814_vm8, %v1898_v21, %v3136_v15 }
 0x286   :  { %v3144_v39 = vpop.permute.xlu0 %3143  ;;  %v3151_v29 = vunpack.i.h.bf16 %v4523_v38  ;;  %v3150_v61 = vunpack.i.l.bf16 %v4523_v38 }
 0x287   :  { %v3146_v52 = vunpack.i.h.bf16 %v3144_v39  ;;  %v3145_v17 = vunpack.i.l.bf16 %v3144_v39 }
 0x288   :  { %v1932_v55 = vsel %vm1929_vm13, %v1915_v5, %v3150_v61  ;;  %v1933_v47 = vsel %vm1929_vm13, %v1916_v6, %v3151_v29 }
 0x289   :  { %v3159_v46 = vpop.permute.xlu1 %3158  ;;  %v1930_v30 = vsel %vm1929_vm13, %v1913_v28, %v3145_v17  ;;  %v1931_v41 = vsel %vm1929_vm13, %v1914_v33, %v3146_v52 }
 0x28a   :  { %v3154_v10 = vpop.permute.xlu0 %3153  ;;  %v3161_v57 = vunpack.i.h.bf16 %v3159_v46  ;;  %v3160_v35 = vunpack.i.l.bf16 %v3159_v46 }
 0x28b   :  { %v3156_v23 = vunpack.i.h.bf16 %v3154_v10  ;;  %v3155_v24 = vunpack.i.l.bf16 %v3154_v10 }
 0x28c   :  { %v1949_v8 = vsel %vm1946_vm14, %v1932_v55, %v3160_v35  ;;  %v1950_v63 = vsel %vm1946_vm14, %v1933_v47, %v3161_v57 }
 0x28d   :  { %v3169_v34 = vpop.permute.xlu1 %3168  ;;  %v1947_v36 = vsel %vm1946_vm14, %v1930_v30, %v3155_v24  ;;  %v1948_v39 = vsel %vm1946_vm14, %v1931_v41, %v3156_v23 }
 0x28e   :  { %v3164_v19 = vpop.permute.xlu0 %3163  ;;  %v3171_v51 = vunpack.i.h.bf16 %v3169_v34  ;;  %v3170_v2 = vunpack.i.l.bf16 %v3169_v34 }
 0x28f   :  { %v3166_v27 = vunpack.i.h.bf16 %v3164_v19  ;;  %v3165_v32 = vunpack.i.l.bf16 %v3164_v19 }
 0x290   :  { %v1966_v11 = vsel %vm1963_vm15, %v1949_v8, %v3170_v2  ;;  %v1967_v22 = vsel %vm1963_vm15, %v1950_v63, %v3171_v51 }
 0x291   :  { %v3179_v58 = vpop.permute.xlu1 %3178  ;;  %v1964_v3 = vsel %vm1963_vm15, %v1947_v36, %v3165_v32  ;;  %v1965_v38 = vsel %vm1963_vm15, %v1948_v39, %v3166_v27 }
 0x292   :  { %v3174_v37 = vpop.permute.xlu0 %3173  ;;  %v3181_v23 = vunpack.i.h.bf16 %v3179_v58  ;;  %v3180_v24 = vunpack.i.l.bf16 %v3179_v58 }
 0x293   :  { %v3176_v60 = vunpack.i.h.bf16 %v3174_v37  ;;  %v3175_v50 = vunpack.i.l.bf16 %v3174_v37 }
 0x294   :  { %v1870_v37 = vsel %vm712_vm2, %v4414_v43, %v3181_v23  ;;  %v1869_v58 = vsel %vm712_vm2, %v4392_v42, %v3180_v24 }
 0x295   :  { %v1981_v13 = vsel %vm1980_vm0, %v1964_v3, %v3175_v50  ;;  %v1982_v4 = vsel %vm1980_vm0, %v1965_v38, %v3176_v60  ;;  %v3189_v10 = vpop.permute.xlu1 %3188 }
 0x296   :  { %v1997_v46 = vpack.c.bf16 %v1982_v4, %v1981_v13  ;;  %v3184_v49 = vpop.permute.xlu0 %3183  ;;  %v3191_v62 = vunpack.i.h.bf16 %v3189_v10  ;;  %v3190_v21 = vunpack.i.l.bf16 %v3189_v10 }
 0x297   :  { %v3186_v9 = vunpack.i.h.bf16 %v3184_v49  ;;  %v3185_v31 = vunpack.i.l.bf16 %v3184_v49 }
 0x298   :  { %2719 = vmatprep.mubr.msk.bf16.mxu1 %vm2041_vm1, %v1997_v46  ;;  %v1872_v30 = vsel %vm712_vm2, %v4439_v16, %v3191_v62  ;;  %v1871_v41 = vsel %vm712_vm2, %v4441_v14, %v3190_v21 }
 0x299   :  { %v1984_v12 = vsel %vm1980_vm0, %v1967_v22, %v3186_v9  ;;  %v1983_v54 = vsel %vm1980_vm0, %v1966_v11, %v3185_v31  ;;  %v3199_v15 = vpop.permute.xlu1 %3198 }
 0x29a   :  { %v1998_v20 = vpack.c.bf16 %v1984_v12, %v1983_v54  ;;  %v3194_v56 = vpop.permute.xlu0 %3193  ;;  %v3201_v25 = vunpack.i.h.bf16 %v3199_v15  ;;  %v3200_v26 = vunpack.i.l.bf16 %v3199_v15 }
 0x29b   :  { %v3196_v27 = vunpack.i.h.bf16 %v3194_v56  ;;  %v3195_v32 = vunpack.i.l.bf16 %v3194_v56 }
 0x29c   :  { %2720 = vmatmul.mubr.msk.bf16.vlgmr.msra.gmra.mxu1 %vm2041_vm1, %v1998_v20  ;;  %v1887_v36 = vsel %vm746_vm4, %v1871_v41, %v3200_v26  ;;  %v1888_v39 = vsel %vm746_vm4, %v1872_v30, %v3201_v25 }
 0x29d   :  { %v3209_v59 = vpop.permute.xlu1 %3208  ;;  %v1886_v60 = vsel %vm746_vm4, %v1870_v37, %v3196_v27  ;;  %v1885_v50 = vsel %vm746_vm4, %v1869_v58, %v3195_v32 }
 0x29e   :  { %v3204_v44 = vpop.permute.xlu0 %3203  ;;  %v3211_v28 = vunpack.i.h.bf16 %v3209_v59  ;;  %v3210_v33 = vunpack.i.l.bf16 %v3209_v59 }
 0x29f   :  { %v3206_v57 = vunpack.i.h.bf16 %v3204_v44  ;;  %v3205_v35 = vunpack.i.l.bf16 %v3204_v44 }
 0x2a0   :  { %v1903_v14 = vsel %vm780_vm6, %v1887_v36, %v3210_v33  ;;  %v1904_v2 = vsel %vm780_vm6, %v1888_v39, %v3211_v28 }
 0x2a1   :  { %v4566_v52 = vpop.permute.xlu1 %3218  ;;  %v1901_v42 = vsel %vm780_vm6, %v1885_v50, %v3205_v35  ;;  %v1902_v6 = vsel %vm780_vm6, %v1886_v60, %v3206_v57 }
 0x2a2   :  { %v3214_v17 = vpop.permute.xlu0 %3213  ;;  %v3221_v55 = vunpack.i.h.bf16 %v4566_v52  ;;  %v3220_v47 = vunpack.i.l.bf16 %v4566_v52 }
 0x2a3   :  { %v3216_v16 = vunpack.i.h.bf16 %v3214_v17  ;;  %v3215_v51 = vunpack.i.l.bf16 %v3214_v17 }
 0x2a4   :  { %v1919_v62 = vsel %vm814_vm8, %v1903_v14, %v3220_v47  ;;  %v1920_v21 = vsel %vm814_vm8, %v1904_v2, %v3221_v55 }
 0x2a5   :  { %v4568_v34 = vpop.permute.xlu1 %3228  ;;  %v1917_v49 = vsel %vm814_vm8, %v1901_v42, %v3215_v51  ;;  %v1918_v8 = vsel %vm814_vm8, %v1902_v6, %v3216_v16 }
 0x2a6   :  { %v3224_v19 = vpop.permute.xlu0 %3223  ;;  %v3231_v63 = vunpack.i.h.bf16 %v4568_v34  ;;  %v3230_v9 = vunpack.i.l.bf16 %v4568_v34 }
 0x2a7   :  { %v3226_v3 = vunpack.i.h.bf16 %v3224_v19  ;;  %v3225_v38 = vunpack.i.l.bf16 %v3224_v19 }
 0x2a8   :  { %v1936_v25 = vsel %vm1929_vm13, %v1919_v62, %v3230_v9  ;;  %v1937_v26 = vsel %vm1929_vm13, %v1920_v21, %v3231_v63 }
 0x2a9   :  { %v3239_v29 = vpop.permute.xlu1 %3238  ;;  %v1934_v31 = vsel %vm1929_vm13, %v1917_v49, %v3225_v38  ;;  %v1935_v11 = vsel %vm1929_vm13, %v1918_v8, %v3226_v3 }
 0x2aa   :  { %v3234_v61 = vpop.permute.xlu0 %3233  ;;  %v3241_v22 = vunpack.i.h.bf16 %v3239_v29  ;;  %v3240_v12 = vunpack.i.l.bf16 %v3239_v29 }
 0x2ab   :  { %v3236_v13 = vunpack.i.h.bf16 %v3234_v61  ;;  %v3235_v4 = vunpack.i.l.bf16 %v3234_v61 }
 0x2ac   :  { %v1953_v33 = vsel %vm1946_vm14, %v1936_v25, %v3240_v12  ;;  %v1954_v29 = vsel %vm1946_vm14, %v1937_v26, %v3241_v22 }
 0x2ad   :  { %v3249_v43 = vpop.permute.xlu1 %3248  ;;  %v1951_v15 = vsel %vm1946_vm14, %v1934_v31, %v3235_v4  ;;  %v1952_v56 = vsel %vm1946_vm14, %v1935_v11, %v3236_v13  ;;  %v1216_v13 = vld [vmem:[#allocation2 + $0xa0] sm:$0xff] }
 0x2ae   :  { %v3244_v5 = vpop.permute.xlu0 %3243  ;;  %v3251_v52 = vunpack.i.h.bf16 %v3249_v43  ;;  %v3250_v17 = vunpack.i.l.bf16 %v3249_v43 }
 0x2af   :  { %v3246_v46 = vunpack.i.h.bf16 %v3244_v5  ;;  %v3245_v10 = vunpack.i.l.bf16 %v3244_v5 }
 0x2b0   :  { %v1970_v41 = vsel %vm1963_vm15, %v1953_v33, %v3250_v17  ;;  %v1971_v57 = vsel %vm1963_vm15, %v1954_v29, %v3251_v52 }
 0x2b1   :  { %v3259_v54 = vpop.permute.xlu1 %3258  ;;  %v1968_v19 = vsel %vm1963_vm15, %v1951_v15, %v3245_v10  ;;  %v1969_v34 = vsel %vm1963_vm15, %v1952_v56, %v3246_v46 }
 0x2b2   :  { %v3254_v20 = vpop.permute.xlu0 %3253  ;;  %v3261_v43 = vunpack.i.h.bf16 %v3259_v54  ;;  %v3260_v5 = vunpack.i.l.bf16 %v3259_v54 }
 0x2b3   :  { %v3256_v59 = vunpack.i.h.bf16 %v3254_v20  ;;  %v3255_v44 = vunpack.i.l.bf16 %v3254_v20 }
 0x2b4   :  { %v1874_v11 = vsel %vm712_vm2, %v4468_v0, %v3261_v43  ;;  %v1873_v22 = vsel %vm712_vm2, %v1216_v13, %v3260_v5 }
 0x2b5   :  { %v1985_v23 = vsel %vm1980_vm0, %v1968_v19, %v3255_v44  ;;  %v1986_v24 = vsel %vm1980_vm0, %v1969_v34, %v3256_v59  ;;  %v3269_v32 = vpop.permute.xlu1 %3268 }
 0x2b6   :  { %v1999_v27 = vpack.c.bf16 %v1986_v24, %v1985_v23  ;;  %v3264_v28 = vpop.permute.xlu0 %3263  ;;  %v3271_v3 = vunpack.i.h.bf16 %v3269_v32  ;;  %v3270_v38 = vunpack.i.l.bf16 %v3269_v32 }
 0x2b7   :  { %v3266_v61 = vunpack.i.h.bf16 %v3264_v28  ;;  %v3265_v30 = vunpack.i.l.bf16 %v3264_v28 }
 0x2b8   :  { %2723 = vmatprep.mubr.msk.bf16.mxu1 %vm2041_vm1, %v1999_v27  ;;  %v1876_v8 = vsel %vm712_vm2, %v4464_v53, %v3271_v3  ;;  %v1875_v63 = vsel %vm712_vm2, %v4470_v1, %v3270_v38 }
 0x2b9   :  { %v1988_v35 = vsel %vm1980_vm0, %v1971_v57, %v3266_v61  ;;  %v1987_v37 = vsel %vm1980_vm0, %v1970_v41, %v3265_v30  ;;  %v3279_v36 = vpop.permute.xlu1 %3278 }
 0x2ba   :  { %v2000_v58 = vpack.c.bf16 %v1988_v35, %v1987_v37  ;;  %v3274_v39 = vpop.permute.xlu0 %3273  ;;  %v3281_v42 = vunpack.i.h.bf16 %v3279_v36  ;;  %v3280_v6 = vunpack.i.l.bf16 %v3279_v36 }
 0x2bb   :  { %v3276_v4 = vunpack.i.h.bf16 %v3274_v39  ;;  %v3275_v55 = vunpack.i.l.bf16 %v3274_v39 }
 0x2bc   :  { %2724 = vmatmul.mubr.msk.bf16.gmra.mxu1 %vm2041_vm1, %v2000_v58  ;;  %v1891_v12 = vsel %vm746_vm4, %v1875_v63, %v3280_v6  ;;  %v1892_v54 = vsel %vm746_vm4, %v1876_v8, %v3281_v42 }
 0x2bd   :  { %v3289_v60 = vpop.permute.xlu1 %3288  ;;  %v1890_v20 = vsel %vm746_vm4, %v1874_v11, %v3276_v4  ;;  %v1889_v15 = vsel %vm746_vm4, %v1873_v22, %v3275_v55 }
 0x2be   :  { %v3284_v50 = vpop.permute.xlu0 %3283  ;;  %v3291_v47 = vunpack.i.h.bf16 %v3289_v60  ;;  %v3290_v46 = vunpack.i.l.bf16 %v3289_v60 }
 0x2bf   :  { %v3286_v9 = vunpack.i.h.bf16 %v3284_v50  ;;  %v3285_v31 = vunpack.i.l.bf16 %v3284_v50 }
 0x2c0   :  { %v1907_v59 = vsel %vm780_vm6, %v1891_v12, %v3290_v46  ;;  %v1908_v1 = vsel %vm780_vm6, %v1892_v54, %v3291_v47 }
 0x2c1   :  { %v4612_v16 = vpop.permute.xlu1 %3298  ;;  %v1905_v19 = vsel %vm780_vm6, %v1889_v15, %v3285_v31  ;;  %v1906_v34 = vsel %vm780_vm6, %v1890_v20, %v3286_v9 }
 0x2c2   :  { %v3294_v51 = vpop.permute.xlu0 %3293  ;;  %v3301_v23 = vunpack.i.h.bf16 %v4612_v16  ;;  %v3300_v24 = vunpack.i.l.bf16 %v4612_v16 }
 0x2c3   :  { %v3296_v56 = vunpack.i.h.bf16 %v3294_v51  ;;  %v3295_v53 = vunpack.i.l.bf16 %v3294_v51 }
 0x2c5   :  { %v4614_v14 = vpop.permute.xlu1 %3308  ;;  %v1921_v27 = vsel %vm814_vm8, %v1905_v19, %v3295_v53  ;;  %v1922_v32 = vsel %vm814_vm8, %v1906_v34, %v3296_v56 }
 0x2c6   :  { %v3304_v2 = vpop.permute.xlu0 %3303  ;;  %v3311_v28 = vunpack.i.h.bf16 %v4614_v14  ;;  %v3310_v33 = vunpack.i.l.bf16 %v4614_v14  ;;  %v1923_v14 = vsel %vm814_vm8, %v1907_v59, %v3300_v24 }
 0x2c7   :  { %v3306_v44 = vunpack.i.h.bf16 %v3304_v2  ;;  %v3305_v52 = vunpack.i.l.bf16 %v3304_v2  ;;  %v1924_v2 = vsel %vm814_vm8, %v1908_v1, %v3301_v23 }
 0x2c8   :  { %v1940_v43 = vsel %vm1929_vm13, %v1923_v14, %v3310_v33  ;;  %v1941_v5 = vsel %vm1929_vm13, %v1924_v2, %v3311_v28 }
 0x2c9   :  { %v3319_v10 = vpop.permute.xlu1 %3318  ;;  %v1938_v29 = vsel %vm1929_vm13, %v1921_v27, %v3305_v52  ;;  %v1939_v61 = vsel %vm1929_vm13, %v1922_v32, %v3306_v44 }
 0x2ca   :  { %v3314_v49 = vpop.permute.xlu0 %3313  ;;  %v3321_v30 = vunpack.i.h.bf16 %v3319_v10  ;;  %v3320_v41 = vunpack.i.l.bf16 %v3319_v10 }
 0x2cb   :  { %v3316_v62 = vunpack.i.h.bf16 %v3314_v49  ;;  %v3315_v21 = vunpack.i.l.bf16 %v3314_v49 }
 0x2cc   :  { %v1957_v4 = vsel %vm1946_vm14, %v1940_v43, %v3320_v41  ;;  %v1958_v55 = vsel %vm1946_vm14, %v1941_v5, %v3321_v30 }
 0x2cd   :  { %v3329_v17 = vpop.permute.xlu1 %3328  ;;  %v1955_v37 = vsel %vm1946_vm14, %v1938_v29, %v3315_v21  ;;  %v1956_v58 = vsel %vm1946_vm14, %v1939_v61, %v3316_v62 }
 0x2ce   :  { %v3324_v0 = vpop.permute.xlu0 %3323  ;;  %v3331_v60 = vunpack.i.h.bf16 %v3329_v17  ;;  %v3330_v50 = vunpack.i.l.bf16 %v3329_v17 }
 0x2cf   :  { %v3326_v25 = vunpack.i.h.bf16 %v3324_v0  ;;  %v3325_v26 = vunpack.i.l.bf16 %v3324_v0 }
 0x2d0   :  { %v1974_v10 = vsel %vm1963_vm15, %v1957_v4, %v3330_v50  ;;  %v1975_v49 = vsel %vm1963_vm15, %v1958_v55, %v3331_v60 }
 0x2d1   :  { %v3339_v57 = vpop.permute.xlu1 %3338  ;;  %v1972_v16 = vsel %vm1963_vm15, %v1955_v37, %v3325_v26  ;;  %v1973_v51 = vsel %vm1963_vm15, %v1956_v58, %v3326_v25 }
 0x2d2   :  { %v3334_v35 = vpop.permute.xlu0 %3333  ;;  %v3341_v15 = vunpack.i.h.bf16 %v3339_v57  ;;  %v3340_v56 = vunpack.i.l.bf16 %v3339_v57 }
 0x2d3   :  { %v3336_v36 = vunpack.i.h.bf16 %v3334_v35  ;;  %v3335_v39 = vunpack.i.l.bf16 %v3334_v35 }
 0x2d4   :  { %v1878_v24 = vsel %vm712_vm2, %v4482_v40, %v3341_v15  ;;  %v1877_v25 = vsel %vm712_vm2, %v4466_v45, %v3340_v56 }
 0x2d5   :  { %v1989_v3 = vsel %vm1980_vm0, %v1972_v16, %v3335_v39  ;;  %v1990_v38 = vsel %vm1980_vm0, %v1973_v51, %v3336_v36  ;;  %v3349_v6 = vpop.permute.xlu1 %3348 }
 0x2d6   :  { %v2001_v42 = vpack.c.bf16 %v1990_v38, %v1989_v3  ;;  %v3344_v13 = vpop.permute.xlu0 %3343  ;;  %v3351_v53 = vunpack.i.h.bf16 %v3349_v6  ;;  %v3350_v59 = vunpack.i.l.bf16 %v3349_v6 }
 0x2d7   :  { %v3346_v47 = vunpack.i.h.bf16 %v3344_v13  ;;  %v3345_v46 = vunpack.i.l.bf16 %v3344_v13 }
 0x2d8   :  { %2727 = vmatprep.mubr.msk.bf16.mxu1 %vm2041_vm1, %v2001_v42  ;;  %v1880_v26 = vsel %vm712_vm2, %v4498_v7, %v3351_v53  ;;  %v1879_v27 = vsel %vm712_vm2, %v4500_v18, %v3350_v59 }
 0x2d9   :  { %v1992_v8 = vsel %vm1980_vm0, %v1975_v49, %v3346_v47  ;;  %v1991_v63 = vsel %vm1980_vm0, %v1974_v10, %v3345_v46  ;;  %v3359_v31 = vpop.permute.xlu1 %3358 }
 0x2da   :  { %v2002_v9 = vpack.c.bf16 %v1992_v8, %v1991_v63  ;;  %v3354_v11 = vpop.permute.xlu0 %3353  ;;  %v3361_v1 = vunpack.i.h.bf16 %v3359_v31  ;;  %v3360_v44 = vunpack.i.l.bf16 %v3359_v31 }
 0x2db   :  { %v3356_v52 = vunpack.i.h.bf16 %v3354_v11  ;;  %v3355_v17 = vunpack.i.l.bf16 %v3354_v11 }
 0x2dc   :  { %2728 = vmatmul.mubr.msk.bf16.gmra.mxu1 %vm2041_vm1, %v2002_v9  ;;  %v1895_v32 = vsel %vm746_vm4, %v1879_v27, %v3360_v44  ;;  %v1896_v28 = vsel %vm746_vm4, %v1880_v26, %v3361_v1 }
 0x2dd   :  { %v3369_v22 = vpop.permute.xlu1 %3368  ;;  %v1894_v33 = vsel %vm746_vm4, %v1878_v24, %v3356_v52  ;;  %v1893_v29 = vsel %vm746_vm4, %v1877_v25, %v3355_v17 }
 0x2de   :  { %v3364_v12 = vpop.permute.xlu0 %3363  ;;  %v3371_v34 = vunpack.i.h.bf16 %v3369_v22  ;;  %v3370_v62 = vunpack.i.l.bf16 %v3369_v22 }
 0x2df   :  { %v3366_v21 = vunpack.i.h.bf16 %v3364_v12  ;;  %v3365_v23 = vunpack.i.l.bf16 %v3364_v12 }
 0x2e0   :  { %v1911_v35 = vsel %vm780_vm6, %v1895_v32, %v3370_v62  ;;  %v1912_v7 = vsel %vm780_vm6, %v1896_v28, %v3371_v34 }
 0x2e1   :  { %v3379_v54 = vpop.permute.xlu1 %3378  ;;  %v1909_v18 = vsel %vm780_vm6, %v1893_v29, %v3365_v23  ;;  %v1910_v37 = vsel %vm780_vm6, %v1894_v33, %v3366_v21 }
 0x2e2   :  { %v3374_v20 = vpop.permute.xlu0 %3373  ;;  %v3381_v40 = vunpack.i.h.bf16 %v3379_v54  ;;  %v3380_v41 = vunpack.i.l.bf16 %v3379_v54 }
 0x2e3   :  { %v3376_v57 = vunpack.i.h.bf16 %v3374_v20  ;;  %v3375_v45 = vunpack.i.l.bf16 %v3374_v20 }
 0x2e4   :  { %v1927_v38 = vsel %vm814_vm8, %v1911_v35, %v3380_v41  ;;  %v1928_v43 = vsel %vm814_vm8, %v1912_v7, %v3381_v40 }
 0x2e5   :  { %v3389_v0 = vpop.permute.xlu1 %3388  ;;  %v1925_v5 = vsel %vm814_vm8, %v1909_v18, %v3375_v45  ;;  %v1926_v42 = vsel %vm814_vm8, %v1910_v37, %v3376_v57 }
 0x2e6   :  { %v3384_v19 = vpop.permute.xlu0 %3383  ;;  %v3391_v58 = vunpack.i.h.bf16 %v3389_v0  ;;  %v3390_v36 = vunpack.i.l.bf16 %v3389_v0 }
 0x2e7   :  { %v3386_v39 = vunpack.i.h.bf16 %v3384_v19  ;;  %v3385_v60 = vunpack.i.l.bf16 %v3384_v19 }
 0x2e8   :  { %v1944_v47 = vsel %vm1929_vm13, %v1927_v38, %v3390_v36  ;;  %v1945_v46 = vsel %vm1929_vm13, %v1928_v43, %v3391_v58 }
 0x2e9   :  { %v3399_v61 = vpop.permute.xlu1 %3398  ;;  %v1942_v10 = vsel %vm1929_vm13, %v1925_v5, %v3385_v60  ;;  %v1943_v49 = vsel %vm1929_vm13, %v1926_v42, %v3386_v39 }
 0x2ea   :  { %v3394_v30 = vpop.permute.xlu0 %3393  ;;  %v3401_v50 = vunpack.i.h.bf16 %v3399_v61  ;;  %v3400_v16 = vunpack.i.l.bf16 %v3399_v61 }
 0x2eb   :  { %v3396_v51 = vunpack.i.h.bf16 %v3394_v30  ;;  %v3395_v14 = vunpack.i.l.bf16 %v3394_v30 }
 0x2ec   :  { %v1961_v8 = vsel %vm1946_vm14, %v1944_v47, %v3400_v16  ;;  %v1962_v63 = vsel %vm1946_vm14, %v1945_v46, %v3401_v50 }
 0x2ed   :  { %v3409_v2 = vpop.permute.xlu1 %3408  ;;  %v1959_v9 = vsel %vm1946_vm14, %v1942_v10, %v3395_v14  ;;  %v1960_v31 = vsel %vm1946_vm14, %v1943_v49, %v3396_v51 }
 0x2ee   :  { %v3404_v3 = vpop.permute.xlu0 %3403  ;;  %v3411_v6 = vunpack.i.h.bf16 %v3409_v2  ;;  %v3410_v13 = vunpack.i.l.bf16 %v3409_v2 }
 0x2ef   :  { %v3406_v4 = vunpack.i.h.bf16 %v3404_v3  ;;  %v3405_v55 = vunpack.i.l.bf16 %v3404_v3 }
 0x2f0   :  { %v1978_v56 = vsel %vm1963_vm15, %v1961_v8, %v3410_v13  ;;  %v1979_v53 = vsel %vm1963_vm15, %v1962_v63, %v3411_v6 }
 0x2f1   :  { %v3419_v11 = vpop.permute.xlu1 %3418  ;;  %v1976_v59 = vsel %vm1963_vm15, %v1959_v9, %v3405_v55  ;;  %v1977_v1 = vsel %vm1963_vm15, %v1960_v31, %v3406_v4 }
 0x2f2   :  { %v3414_v22 = vpop.permute.xlu0 %3413  ;;  %v3421_v12 = vunpack.i.h.bf16 %v3419_v11  ;;  %v3420_v54 = vunpack.i.l.bf16 %v3419_v11 }
 0x2f3   :  { %v3416_v20 = vunpack.i.h.bf16 %v3414_v22  ;;  %v3415_v15 = vunpack.i.l.bf16 %v3414_v22 }
 0x2f4   :  { %v1995_v44 = vsel %vm1980_vm0, %v1978_v56, %v3420_v54  ;;  %v1996_v52 = vsel %vm1980_vm0, %v1979_v53, %v3421_v12  ;;  %v4768_v53 = vpop.f32.mrf.mxu0 }
 0x2f5   :  { %v1993_v17 = vsel %vm1980_vm0, %v1976_v59, %v3415_v15  ;;  %v1994_v0 = vsel %vm1980_vm0, %v1977_v1, %v3416_v20  ;;  %v2004_v19 = vpack.c.bf16 %v1996_v52, %v1995_v44 }
 0x2f6   :  { %v2003_v34 = vpack.c.bf16 %v1994_v0, %v1993_v17 }
 0x2f8   :  { %2731 = vmatprep.mubr.msk.bf16.mxu1 %vm2041_vm1, %v2003_v34 }
 0x2f9   :  { %2732 = vmatmul.mubr.msk.bf16.gmra.mxu1 %vm2041_vm1, %v2004_v19  ;;  %v4773_v19 = vpop.f32.mrf.mxu0 }
 0x35c   :  { %v4695_v62 = vpop.f32.mrf.mxu1 }
 0x35d   :  { %v2209_v40 = vmul.f32 %v4695_v62, %v4695_v62  ;;  %v2172_v35 = vsel %vm712_vm2, %v4695_v62, 0.0 }
 0x35e   :  { %v4697_v21 = vpop.f32.mrf.mxu1 }
 0x35f   :  { %v2207_v32 = vmul.f32 %v4697_v21, %v4697_v21  ;;  %v2169_v29 = vsel %vm712_vm2, %v4697_v21, 0.0  ;;  %v2226_v37 = vsel %vm712_vm2, %v2209_v40, 0.0 }
 0x360   :  { %v4699_v23 = vpop.f32.mrf.mxu1 }
 0x361   :  { %v2223_v41 = vsel %vm712_vm2, %v2207_v32, 0.0  ;;  %v2210_v58 = vmul.f32 %v4699_v23, %v4699_v23  ;;  %v2174_v60 = vsel %vm712_vm2, %v4699_v23, 0.0 }
 0x362   :  { %v4701_v24 = vpop.f32.mrf.mxu1 }
 0x363   :  { %v2208_v27 = vmul.f32 %v4701_v24, %v4701_v24  ;;  %v2170_v28 = vsel %vm712_vm2, %v4701_v24, 0.0  ;;  %v2228_v2 = vsel %vm712_vm2, %v2210_v58, 0.0 }
 0x364   :  { %v2171_v30 = vadd.f32 %v2170_v28, %v2169_v29 }
 0x365   :  { %v2224_v61 = vsel %vm712_vm2, %v2208_v27, 0.0 }
 0x366   :  { %v2225_v57 = vadd.f32 %v2224_v61, %v2223_v41  ;;  %v2173_v7 = vadd.f32 %v2172_v35, %v2171_v30  ;;  %v4782_v30 = vpop.f32.mrf.mxu0 }
 0x368   :  { %v2227_v39 = vadd.f32 %v2226_v37, %v2225_v57  ;;  %v2175_v51 = vadd.f32 %v2174_v60, %v2173_v7  ;;  %v2380_v60 = vpop.f32.mrf.mxu0 }
 0x36a   :  { %v2229_v5 = vadd.f32 %v2228_v2, %v2227_v39 }
 0x37c   :  { %v4703_v25 = vpop.f32.mrf.mxu1 }
 0x37d   :  { %v2213_v55 = vmul.f32 %v4703_v25, %v4703_v25  ;;  %v2180_v46 = vsel %vm712_vm2, %v4703_v25, 0.0 }
 0x37e   :  { %v4705_v26 = vpop.f32.mrf.mxu1 }
 0x37f   :  { %v2211_v36 = vmul.f32 %v4705_v26, %v4705_v26  ;;  %v2176_v50 = vsel %vm712_vm2, %v4705_v26, 0.0  ;;  %v2234_v8 = vsel %vm712_vm2, %v2213_v55, 0.0  ;;  %v2747_v55 = vpop.f32.mrf.mxu0 }
 0x380   :  { %v4713_v33 = vpop.f32.mrf.mxu1  ;;  %v2177_v43 = vadd.f32 %v2176_v50, %v2175_v51 }
 0x381   :  { %v2230_v3 = vsel %vm712_vm2, %v2211_v36, 0.0  ;;  %v2214_v63 = vmul.f32 %v4713_v33, %v4713_v33  ;;  %v2182_v11 = vsel %vm712_vm2, %v4713_v33, 0.0 }
 0x382   :  { %v4721_v45 = vpop.f32.mrf.mxu1  ;;  %v2231_v6 = vadd.f32 %v2230_v3, %v2229_v5 }
 0x383   :  { %v2212_v16 = vmul.f32 %v4721_v45, %v4721_v45  ;;  %v2178_v38 = vsel %vm712_vm2, %v4721_v45, 0.0  ;;  %v2236_v20 = vsel %vm712_vm2, %v2214_v63, 0.0 }
 0x384   :  { %v2179_v13 = vadd.f32 %v2178_v38, %v2177_v43 }
 0x385   :  { %v2232_v42 = vsel %vm712_vm2, %v2212_v16, 0.0 }
 0x386   :  { %v2233_v47 = vadd.f32 %v2232_v42, %v2231_v6  ;;  %v2181_v10 = vadd.f32 %v2180_v46, %v2179_v13 }
 0x388   :  { %v2235_v31 = vadd.f32 %v2234_v8, %v2233_v47  ;;  %v2183_v54 = vadd.f32 %v2182_v11, %v2181_v10  ;;  %v2393_v11 = vpop.f32.mrf.mxu0 }
 0x38a   :  { %v2237_v1 = vadd.f32 %v2236_v20, %v2235_v31 }
 0x39c   :  { %v4725_v18 = vpop.f32.mrf.mxu1 }
 0x39d   :  { %v2217_v0 = vmul.f32 %v4725_v18, %v4725_v18  ;;  %v2188_v27 = vsel %vm712_vm2, %v4725_v18, 0.0 }
 0x39e   :  { %v4738_v14 = vpop.f32.mrf.mxu1 }
 0x39f   :  { %v2215_v9 = vmul.f32 %v4738_v14, %v4738_v14  ;;  %v2184_v22 = vsel %vm712_vm2, %v4738_v14, 0.0  ;;  %v2242_v29 = vsel %vm712_vm2, %v2217_v0, 0.0 }
 0x3a0   :  { %v4745_v4 = vpop.f32.mrf.mxu1  ;;  %v2185_v59 = vadd.f32 %v2184_v22, %v2183_v54 }
 0x3a1   :  { %v2238_v15 = vsel %vm712_vm2, %v2215_v9, 0.0  ;;  %v2218_v61 = vmul.f32 %v4745_v4, %v4745_v4  ;;  %v2190_v57 = vsel %vm712_vm2, %v4745_v4, 0.0 }
 0x3a2   :  { %v4751_v49 = vpop.f32.mrf.mxu1  ;;  %v2239_v52 = vadd.f32 %v2238_v15, %v2237_v1  ;;  %v2748_v15 = vpop.f32.mrf.mxu0 }
 0x3a3   :  { %v2216_v12 = vmul.f32 %v4751_v49, %v4751_v49  ;;  %v2186_v56 = vsel %vm712_vm2, %v4751_v49, 0.0  ;;  %v2244_v36 = vsel %vm712_vm2, %v2218_v61, 0.0 }
 0x3a4   :  { %v2187_v17 = vadd.f32 %v2186_v56, %v2185_v59 }
 0x3a5   :  { %v2240_v44 = vsel %vm712_vm2, %v2216_v12, 0.0 }
 0x3a6   :  { %v2241_v34 = vadd.f32 %v2240_v44, %v2239_v52  ;;  %v2189_v32 = vadd.f32 %v2188_v27, %v2187_v17  ;;  %v2396_v52 = vpop.f32.mrf.mxu0 }
 0x3a8   :  { %v2243_v40 = vadd.f32 %v2242_v29, %v2241_v34  ;;  %v2191_v37 = vadd.f32 %v2190_v57, %v2189_v32  ;;  %v2751_v34 = vpop.f32.mrf.mxu0 }
 0x3aa   :  { %v2245_v16 = vadd.f32 %v2244_v36, %v2243_v40  ;;  %v2409_v40 = vpop.f32.mrf.mxu0 }
 0x3b9   :  { %v4777_v28 = vpop.f32.mrf.mxu1 }
 0x3ba   :  { %v2221_v2 = vmul.f32 %v4777_v28, %v4777_v28  ;;  %v2196_v42 = vsel %vm712_vm2, %v4777_v28, 0.0 }
 0x3bb   :  { %v4784_v41 = vpop.f32.mrf.mxu1 }
 0x3bc   :  { %v2192_v35 = vsel %vm712_vm2, %v4784_v41, 0.0  ;;  %v2219_v7 = vmul.f32 %v4784_v41, %v4784_v41  ;;  %v2250_v10 = vsel %vm712_vm2, %v2221_v2, 0.0 }
 0x3bd   :  { %v4792_v58 = vpop.f32.mrf.mxu1  ;;  %v2193_v50 = vadd.f32 %v2192_v35, %v2191_v37  ;;  %v2752_v37 = vpop.f32.mrf.mxu0 }
 0x3be   :  { %v2246_v39 = vsel %vm712_vm2, %v2219_v7, 0.0  ;;  %v2222_v6 = vmul.f32 %v4792_v58, %v4792_v58  ;;  %v2198_v8 = vsel %vm712_vm2, %v4792_v58, 0.0 }
 0x3bf   :  { %v4796_v51 = vpop.f32.mrf.mxu1  ;;  %v2247_v43 = vadd.f32 %v2246_v39, %v2245_v16 }
 0x3c0   :  { %v2194_v3 = vsel %vm712_vm2, %v4796_v51, 0.0  ;;  %v2220_v38 = vmul.f32 %v4796_v51, %v4796_v51  ;;  %v2252_v31 = vsel %vm712_vm2, %v2222_v6, 0.0 }
 0x3c1   :  { %v2195_v5 = vadd.f32 %v2194_v3, %v2193_v50  ;;  %v2412_v50 = vpop.f32.mrf.mxu0  ;;  %v2640_v3 = vld [vmem:[%s4871_s8] ss:$0 sm:$0xff] }
 0x3c2   :  { %v2248_v13 = vsel %vm712_vm2, %v2220_v38, 0.0  ;;  %v2378_v6 = vadd.f32 %v2640_v3, %v4773_v19 }
 0x3c3   :  { %v2197_v47 = vadd.f32 %v2196_v42, %v2195_v5  ;;  %v2249_v46 = vadd.f32 %v2248_v13, %v2247_v43  ;;  %v2755_v16 = vpop.f32.mrf.mxu0  ;;  %v2167_v43 = vld [vmem:[%s4868_s5] sm:$0x1]  ;;  %v2386_v42 = vadd.f32 %v4768_v53, %v2640_v3  ;;  %v2389_v13 = vadd.f32 %v4782_v30, %v2640_v3  ;;  %s3472_s5 = smov [#allocation3]  }
 0x3c5   :  { %v2199_v63 = vadd.f32 %v2198_v8, %v2197_v47  ;;  %v2251_v9 = vadd.f32 %v2250_v10, %v2249_v46  ;;  %v2425_v2 = vpop.f32.mrf.mxu0  ;;  %v2381_v47 = vadd.f32 %v2640_v3, %v2380_v60  ;;  %v2402_v46 = vadd.f32 %v2747_v55, %v2640_v3 }
 0x3c6   :  { %v2394_v10 = vadd.f32 %v2640_v3, %v2393_v11  ;;  %v2426_v30 = vadd.f32 %v2640_v3, %v2425_v2 }
 0x3c7   :  { %v2200_v22 = vrot.slane %v2199_v63, 4  ;;  %v2253_v12 = vadd.f32 %v2252_v31, %v2251_v9  ;;  %v2756_v38 = vpop.f32.mrf.mxu0  ;;  %v2405_v9 = vadd.f32 %v2748_v15, %v2640_v3  ;;  %v2397_v31 = vadd.f32 %v2640_v3, %v2396_v52 }
 0x3c8   :  { %v2437_v60 = vadd.f32 %v2756_v38, %v2640_v3 }
 0x3c9   :  { %v2201_v54 = vadd.f32 %v2200_v22, %v2199_v63  ;;  %v2254_v20 = vrot.slane %v2253_v12, 4  ;;  %v2428_v8 = vpop.f32.mrf.mxu0  ;;  %v2418_v22 = vadd.f32 %v2751_v34, %v2640_v3 }
 0x3ca   :  { %v2429_v55 = vadd.f32 %v2640_v3, %v2428_v8 }
 0x3cb   :  { %v2202_v56 = vrot.slane %v2201_v54, 2  ;;  %v2255_v59 = vadd.f32 %v2254_v20, %v2253_v12  ;;  %v2410_v12 = vadd.f32 %v2640_v3, %v2409_v40  ;;  %v2421_v20 = vadd.f32 %v2752_v37, %v2640_v3 }
 0x3cd   :  { %v2203_v1 = vadd.f32 %v2202_v56, %v2201_v54  ;;  %v2256_v44 = vrot.slane %v2255_v59, 2  ;;  %v2168_v54 = vld [vmem:[%s4869_s6] sm:$0x1]  ;;  %v2413_v56 = vadd.f32 %v2640_v3, %v2412_v50  ;;  %s2493_s6 = sshll.u32 %s3472_s5, 4  ;;  %s2494_s6 = int_to_ptr.vmem [resolvable:$true] %s2493_s6 }
 0x3ce   :  { %s3437_s26 = scalar_lea.vmem %s2494_s6, 2048  ;;  %p3442_p1 = scmp.lt.s32.totalorder %s2494_s6, %s2494_s6 }
 0x3cf   :  { %v2204_v17 = vrot.slane %v2203_v1, 1  ;;  %v2257_v0 = vadd.f32 %v2256_v44, %v2255_v59  ;;  %v2434_v59 = vadd.f32 %v2755_v16, %v2640_v3  ;;  %p3438_p0 = scmp.ne.s32.totalorder %s2494_s6, %s3437_s26  ;;  %p3443_p2 = scmp.lt.s32.totalorder %s3437_s26, %s3437_s26 }
 0x3d1   :  { %v2205_v27 = vadd.f32 %v2204_v17, %v2203_v1  ;;  %v2258_v32 = vrot.slane %v2257_v0, 1  ;;  %p3444_p3 = por %p3443_p2, %p3442_p1 }
 0x3d3   :  { %v2206_v29 = vmul.f32 0.0078125, %v2205_v27  ;;  %v2259_v61 = vadd.f32 %v2258_v32, %v2257_v0  ;;  %p3445_p4 = pnand %p3444_p3, %p3438_p0 }
 0x3d5   :  { %v2260_v57 = vmul.f32 0.0078125, %v2259_v61  ;;  %v2261_v35 = vmul.f32 %v2206_v29, %v2206_v29 }
 0x3d7   :  { %v2262_v7 = vsub.f32 %v2260_v57, %v2261_v35 }
 0x3d9   :  { %v2263_v36 = vmax.f32 %v2262_v7, 0.0 }
 0x3db   :  { %v2264_v39 = vadd.f32 1e-05, %v2263_v36 }
 0x3dd   :  { %3435 = vrsqrt.f32 %v2264_v39 }
 0x3ea   :  { %v3436_v5 = vpop.eup %3435 }
 0x3eb   :  { %v2266_v63 = vmul.f32 %v3436_v5, %v2167_v43 }
 0x3ed   :  { %v2271_v53 = vrot.slane %v2266_v63, %v4350_v48  ;;  %v2289_v19 = vmul.f32 %v2266_v63, %v2206_v29 }
 0x3ef   :  { %v2286_v11 = vmul.f32 %v2271_v53, %v4796_v51  ;;  %v2290_v1 = vsub.f32 %v2168_v54, %v2289_v19  ;;  %v2273_v15 = vmul.f32 %v2271_v53, %v4697_v21  ;;  %v2274_v44 = vmul.f32 %v2271_v53, %v4701_v24 }
 0x3f0   :  { %v2275_v52 = vmul.f32 %v4695_v62, %v2271_v53  ;;  %v2276_v17 = vmul.f32 %v4699_v23, %v2271_v53  ;;  %v2277_v0 = vmul.f32 %v2271_v53, %v4705_v26  ;;  %v2278_v34 = vmul.f32 %v2271_v53, %v4721_v45 }
 0x3f1   :  { %v2295_v27 = vrot.slane %v2290_v1, %v4350_v48  ;;  %v2279_v32 = vmul.f32 %v4703_v25, %v2271_v53  ;;  %v2280_v29 = vmul.f32 %v4713_v33, %v2271_v53  ;;  %v2281_v51 = vmul.f32 %v2271_v53, %v4738_v14 }
 0x3f2   :  { %v2282_v21 = vmul.f32 %v2271_v53, %v4751_v49  ;;  %v2283_v24 = vmul.f32 %v4725_v18, %v2271_v53  ;;  %v2284_v62 = vmul.f32 %v4745_v4, %v2271_v53  ;;  %v2285_v23 = vmul.f32 %v2271_v53, %v4784_v41 }
 0x3f3   :  { %v2310_v61 = vadd.f32 %v2295_v27, %v2286_v11  ;;  %v2287_v26 = vmul.f32 %v4777_v28, %v2271_v53  ;;  %v2288_v45 = vmul.f32 %v4792_v58, %v2271_v53  ;;  %v2297_v48 = vadd.f32 %v2295_v27, %v2273_v15 }
 0x3f4   :  { %v2298_v40 = vadd.f32 %v2295_v27, %v2274_v44  ;;  %v2299_v25 = vadd.f32 %v2295_v27, %v2275_v52  ;;  %v2300_v57 = vadd.f32 %v2295_v27, %v2276_v17  ;;  %v2301_v33 = vadd.f32 %v2295_v27, %v2277_v0 }
 0x3f5   :  { %v2453_v35 = vadd.f32 %v2429_v55, %v2310_v61  ;;  %v2302_v14 = vadd.f32 %v2295_v27, %v2278_v34  ;;  %v2303_v7 = vadd.f32 %v2295_v27, %v2279_v32  ;;  %v2304_v49 = vadd.f32 %v2295_v27, %v2280_v29 }
 0x3f6   :  { %v2305_v37 = vadd.f32 %v2295_v27, %v2281_v51  ;;  %v2306_v18 = vadd.f32 %v2295_v27, %v2282_v21  ;;  %v2307_v36 = vadd.f32 %v2295_v27, %v2283_v24  ;;  %v2308_v4 = vadd.f32 %v2295_v27, %v2284_v62 }
 0x3f7   :  { %v2469_v39 = vmax.f32 %v2453_v35, 0.0  ;;  %v2309_v41 = vadd.f32 %v2295_v27, %v2285_v23  ;;  %v2311_v50 = vadd.f32 %v2295_v27, %v2287_v26  ;;  %v2312_v16 = vadd.f32 %v2295_v27, %v2288_v45 }
 0x3f8   :  { %v2440_v28 = vadd.f32 %v2378_v6, %v2297_v48  ;;  %v2441_v2 = vadd.f32 %v2381_v47, %v2298_v40  ;;  %v2442_v58 = vadd.f32 %v2386_v42, %v2299_v25  ;;  %v2443_v3 = vadd.f32 %v2389_v13, %v2300_v57 }
 0x3f9   :  { %2485 = vst.msk [vmem:[#allocation3 + $0x68] sm:$0xff] %vm712_vm2, %v2469_v39  ;;  %v2444_v38 = vadd.f32 %v2394_v10, %v2301_v33  ;;  %v2445_v43 = vadd.f32 %v2397_v31, %v2302_v14  ;;  %v2446_v5 = vadd.f32 %v2402_v46, %v2303_v7  ;;  %v2447_v8 = vadd.f32 %v2405_v9, %v2304_v49 }
 0x3fa   :  { %v2448_v63 = vadd.f32 %v2410_v12, %v2305_v37  ;;  %v2449_v54 = vadd.f32 %v2413_v56, %v2306_v18  ;;  %v2450_v53 = vadd.f32 %v2418_v22, %v2307_v36  ;;  %v2451_v19 = vadd.f32 %v2421_v20, %v2308_v4 }
 0x3fb   :  { %v2452_v55 = vadd.f32 %v2426_v30, %v2309_v41  ;;  %v2454_v11 = vadd.f32 %v2434_v59, %v2311_v50  ;;  %v2455_v1 = vadd.f32 %v2437_v60, %v2312_v16  ;;  %v2456_v15 = vmax.f32 %v2440_v28, 0.0 }
 0x3fc   :  { %v2457_v44 = vmax.f32 %v2441_v2, 0.0  ;;  %v2458_v52 = vmax.f32 %v2442_v58, 0.0  ;;  %v2459_v6 = vmax.f32 %v2443_v3, 0.0  ;;  %v2460_v47 = vmax.f32 %v2444_v38, 0.0 }
 0x3fd   :  { %v2461_v42 = vmax.f32 %v2445_v43, 0.0  ;;  %v2462_v13 = vmax.f32 %v2446_v5, 0.0  ;;  %v2463_v10 = vmax.f32 %v2447_v8, 0.0  ;;  %v2464_v31 = vmax.f32 %v2448_v63, 0.0  ;;  %2472 = vst.msk [vmem:[#allocation3] sm:$0xff] %vm712_vm2, %v2456_v15 }
 0x3fe   :  { %v2465_v46 = vmax.f32 %v2449_v54, 0.0  ;;  %v2466_v9 = vmax.f32 %v2450_v53, 0.0  ;;  %v2467_v22 = vmax.f32 %v2451_v19, 0.0  ;;  %v2468_v12 = vmax.f32 %v2452_v55, 0.0  ;;  %2473 = vst.msk [vmem:[#allocation3 + $0x8] sm:$0xff] %vm712_vm2, %v2457_v44  ;;  %2474 = vst.msk [vmem:[#allocation3 + $0x10] sm:$0xff] %vm712_vm2, %v2458_v52 }
 0x3ff   :  { %2475 = vst.msk [vmem:[#allocation3 + $0x18] sm:$0xff] %vm712_vm2, %v2459_v6  ;;  %2476 = vst.msk [vmem:[#allocation3 + $0x20] sm:$0xff] %vm712_vm2, %v2460_v47  ;;  %v2470_v20 = vmax.f32 %v2454_v11, 0.0  ;;  %v2471_v56 = vmax.f32 %v2455_v1, 0.0 }
 0x400   :  { %2477 = vst.msk [vmem:[#allocation3 + $0x28] sm:$0xff] %vm712_vm2, %v2461_v42  ;;  %2478 = vst.msk [vmem:[#allocation3 + $0x30] sm:$0xff] %vm712_vm2, %v2462_v13 }
 0x401   :  { %2479 = vst.msk [vmem:[#allocation3 + $0x38] sm:$0xff] %vm712_vm2, %v2463_v10  ;;  %2480 = vst.msk [vmem:[#allocation3 + $0x40] sm:$0xff] %vm712_vm2, %v2464_v31 }
 0x402   :  { %2481 = vst.msk [vmem:[#allocation3 + $0x48] sm:$0xff] %vm712_vm2, %v2465_v46  ;;  %2482 = vst.msk [vmem:[#allocation3 + $0x50] sm:$0xff] %vm712_vm2, %v2466_v9 }
 0x403   :  { %2483 = vst.msk [vmem:[#allocation3 + $0x58] sm:$0xff] %vm712_vm2, %v2467_v22  ;;  %2484 = vst.msk [vmem:[#allocation3 + $0x60] sm:$0xff] %vm712_vm2, %v2468_v12 }
 0x404   :  { %2486 = vst.msk [vmem:[#allocation3 + $0x70] sm:$0xff] %vm712_vm2, %v2470_v20  ;;  %2487 = vst.msk [vmem:[#allocation3 + $0x78] sm:$0xff] %vm712_vm2, %v2471_v56 }
 0x405   :  { %3448 = shalt.err (!%p3445_p4)
}
 0x406   :  { %s3473_s7 = smov 128  }
 0x407   :  { %2499 = dma.vmem_to_hbm [thread:$0]  %s2494_s6, 2048, %s4872_s9, [#allocation4], %s3473_s7, %s3473_s7, %s3459_s25  }
 0x408   :  { %3457 = dma.done.wait [#allocation4], 2048  }
 0x409   :  { %3458 = vsyncadd [#allocation4], 4294965248 }
 0x40a   :  { %2503 = vsyncpa [#allocation4], 1 }

</bundles_post_ra>
